<compile_context>
chip_gen: v5e
topology: v5e:2x2
jax: 0.10.0
libtpu: 0.0.40
codegen_flags: <defaults>
</compile_context>

<pallas_src>
import functools

import jax
import jax.numpy as jnp
from jax.experimental import pallas as pl
from jax.experimental.pallas import tpu as pltpu


NEG_PAD = -1e9   # logit value for padded label columns (vanishes in the log-sum-exp)


# ----------------------------------------------------------------------------
# helpers
# ----------------------------------------------------------------------------
def _round_up(x, m):
    return (x + m - 1) // m * m


def _pick_tile(n, candidates, fallback):
    for t in candidates:
        if n % t == 0:
            return t
    return fallback


def _vmem_limit(block_bytes):
    """Per-kernel scoped-VMEM request: double-buffered blocks + headroom, clamped so it
    stays comfortably inside v7x's 64 MiB physical VMEM (v5e/v6e have 128 MiB)."""
    return int(min(48 << 20, max(32 << 20, 2 * block_bytes + (4 << 20))))


# ----------------------------------------------------------------------------
# fused linear: [LN] -> matmul + bias [-> gelu] [+ residual]
# ----------------------------------------------------------------------------
def _fused_linear_kernel(*refs, g_count, ln, act, res):
    idx = 0
    x_ref = refs[idx]; idx += 1
    if ln:
        g_ref, bb_ref = refs[idx], refs[idx + 1]; idx += 2
    w_ref, b_ref = refs[idx], refs[idx + 1]; idx += 2
    if res:
        r_ref = refs[idx]; idx += 1
    o_ref = refs[idx]

    x = x_ref[...]
    if ln:  # LayerNorm prologue (f32 math, full feature row -> K untiled)
        xf = x.astype(jnp.float32)
        mu = jnp.mean(xf, axis=-1, keepdims=True)
        var = jnp.mean(jnp.square(xf - mu), axis=-1, keepdims=True)
        x = (xf - mu) * jax.lax.rsqrt(var + 1e-5) * g_ref[...] + bb_ref[...]
    xw = x.astype(w_ref.dtype)   # one bf16 cast, shared by all G matmuls below

    for g in range(g_count):     # static unroll; the (G,K,tn) weight tile is resident
        y = jnp.dot(xw, w_ref[g], preferred_element_type=jnp.float32) + b_ref[g]
        if act == "gelu":
            # tanh GELU routes the transcendental to the otherwise-idle EUP instead of
            # an erf polynomial on the VALU.  ~1e-3 deviation vs torch's exact erf GELU;
            # flip to approximate=False for bit-for-bit fidelity.
            y = jax.nn.gelu(y, approximate=True)
        if res:
            y = y + r_ref[g].astype(jnp.float32)
        o_ref[g] = y.astype(o_ref.dtype)


def fused_linear(x2d, w, b, *, tm, gamma=None, beta=None, act=None, residual=None,
                 out_dtype=jnp.float32, tn_max=1024):
    """[LayerNorm] -> x @ W + b [-> GELU] [+ residual], M/N tiled.

    `w` may be (K, N) or stacked (G, K, N); the stacked form emits (G, M, N) (used for
    the fused Q/K/V projection, no HBM transposes).  The G matmuls are unrolled inside
    the kernel so the normalized x and the resident weight tile are shared across all
    G outputs (LayerNorm computed once per row tile, not per output).

    Grid order is (j?, i) with the row (M) axis innermost, so each weight tile is DMA'd
    once and stays VMEM-resident while x is streamed (no weight re-streaming per row
    tile); with tn_max=1024 most projections need a single N tile.
    Rows must already be padded to a multiple of `tm` by the caller.
    """
    M, K = x2d.shape
    stacked = (w.ndim == 3)
    w3 = w if stacked else w.reshape(1, K, -1)
    G, _, N = w3.shape
    b3 = b.reshape(G, 1, N)
    ln = gamma is not None
    res = residual is not None
    assert M % tm == 0

    tn = N if N <= tn_max else tn_max
    Np = _round_up(N, tn)
    if Np != N:
        w3 = jnp.pad(w3, ((0, 0), (0, 0), (0, Np - N)))
        b3 = jnp.pad(b3, ((0, 0), (0, 0), (0, Np - N)))
    r3 = None
    if res:
        r3 = residual.reshape(G, M, N)
        if Np != N:
            r3 = jnp.pad(r3, ((0, 0), (0, 0), (0, Np - N)))

    nt, mt = Np // tn, M // tm
    kernel = functools.partial(_fused_linear_kernel, g_count=G, ln=ln, act=act, res=res)

    if nt == 1:
        grid = (mt,)
        x_map = lambda i: (i, 0)
        p_map = lambda i: (0, 0)
        w_map = lambda i: (0, 0, 0)
        o_map = lambda i: (0, i, 0)
    else:
        grid = (nt, mt)            # row axis innermost -> weight tile resident across i
        x_map = lambda j, i: (i, 0)
        p_map = lambda j, i: (0, 0)
        w_map = lambda j, i: (0, 0, j)
        o_map = lambda j, i: (0, i, j)

    in_specs = [pl.BlockSpec((tm, K), x_map)]
    args = [x2d]
    if ln:
        in_specs += [pl.BlockSpec((1, K), p_map), pl.BlockSpec((1, K), p_map)]
        args += [gamma.reshape(1, K), beta.reshape(1, K)]
    in_specs += [pl.BlockSpec((G, K, tn), w_map), pl.BlockSpec((G, 1, tn), w_map)]
    args += [w3, b3]
    if res:
        in_specs += [pl.BlockSpec((G, tm, tn), o_map)]
        args += [r3]

    blk_bytes = (tm * K * x2d.dtype.itemsize
                 + G * K * tn * w3.dtype.itemsize
                 + G * tm * tn * jnp.dtype(out_dtype).itemsize
                 + (G * tm * tn * 4 if res else 0))

    out = pl.pallas_call(
        kernel,
        out_shape=jax.ShapeDtypeStruct((G, M, Np), out_dtype),
        grid=grid,
        in_specs=in_specs,
        out_specs=pl.BlockSpec((G, tm, tn), o_map),
        compiler_params=pltpu.CompilerParams(
            dimension_semantics=("parallel",) * len(grid),
            vmem_limit_bytes=_vmem_limit(blk_bytes)),
    )(*args)
    if Np != N:
        out = out[..., :N]
    return out if stacked else out[0]


# ----------------------------------------------------------------------------
# flash attention (online softmax), heads packed along the lane dim
# ----------------------------------------------------------------------------
def _flash_attn_kernel(q_ref, k_ref, v_ref, o_ref, m_sc, l_sc, acc_sc, *, heads, dh):
    ki = pl.program_id(2)

    @pl.when(ki == 0)
    def _init():
        m_sc[...] = jnp.full(m_sc.shape, -jnp.inf, m_sc.dtype)
        l_sc[...] = jnp.zeros(l_sc.shape, l_sc.dtype)
        acc_sc[...] = jnp.zeros(acc_sc.shape, acc_sc.dtype)

    for h in range(heads):                           # static unroll over heads
        sl = slice(h * dh, (h + 1) * dh)
        qh = q_ref[:, sl]                            # bf16; 1/sqrt(dh) folded into Wq/bq
        kh = k_ref[:, sl]
        vh = v_ref[:, sl]
        # contract last dims directly -> no k.T transpose through the XLU
        s = jax.lax.dot_general(qh, kh, (((1,), (1,)), ((), ())),
                                preferred_element_type=jnp.float32)        # (tq, tk)
        m_prev = m_sc[h]                                                   # (tq, 1)
        m_new = jnp.maximum(m_prev, jnp.max(s, axis=-1, keepdims=True))
        alpha = jnp.exp(m_prev - m_new)
        p = jnp.exp(s - m_new)
        l_sc[h] = alpha * l_sc[h] + jnp.sum(p, axis=-1, keepdims=True)
        acc_sc[h] = alpha * acc_sc[h] + jnp.dot(p.astype(jnp.bfloat16), vh,
                                                preferred_element_type=jnp.float32)
        m_sc[h] = m_new

    @pl.when(ki == pl.num_programs(2) - 1)
    def _fin():
        outs = [acc_sc[h] * pl.reciprocal(l_sc[h], approx=True) for h in range(heads)]
        o_ref[...] = jnp.concatenate(outs, axis=-1).astype(o_ref.dtype)   # lane-dense store


def flash_attention(qkv, heads):
    """qkv: (3, B, S, dim) bf16 from the stacked projection (scale already in Q)."""
    _, B, S, dim = qkv.shape
    dh = dim // heads
    # Larger q tiles feed the 256x256 MXU (v6e/v7x) and amortize grid-step overhead;
    # kv tiles stay <=256 to bound the f32 (tq, tk) score/p intermediates for v7x VMEM.
    tq = _pick_tile(S, (512, 256, 128), S)
    tk = _pick_tile(S, (256, 128), S)
    # TODO(synk): ragged-S kv masking; S not a multiple of 128 falls back to one
    # full-length tile (fine for the small test shape).
    grid = (B, S // tq, S // tk)
    isz = qkv.dtype.itemsize
    blk = (tq * dim + 2 * tk * dim + tq * dim) * isz + heads * tq * (dh + 2) * 4
    return pl.pallas_call(
        functools.partial(_flash_attn_kernel, heads=heads, dh=dh),
        out_shape=jax.ShapeDtypeStruct((B, S, dim), qkv.dtype),
        grid=grid,
        in_specs=[pl.BlockSpec((None, None, tq, dim), lambda b, qi, ki: (0, b, qi, 0)),
                  pl.BlockSpec((None, None, tk, dim), lambda b, qi, ki: (1, b, ki, 0)),
                  pl.BlockSpec((None, None, tk, dim), lambda b, qi, ki: (2, b, ki, 0))],
        out_specs=pl.BlockSpec((None, tq, dim), lambda b, qi, ki: (b, qi, 0)),
        scratch_shapes=[pltpu.VMEM((heads, tq, 1), jnp.float32),
                        pltpu.VMEM((heads, tq, 1), jnp.float32),
                        pltpu.VMEM((heads, tq, dh), jnp.float32)],
        compiler_params=pltpu.CompilerParams(
            dimension_semantics=("parallel", "parallel", "arbitrary"),
            vmem_limit_bytes=_vmem_limit(blk)),
    )(qkv, qkv, qkv)


# ----------------------------------------------------------------------------
# NER head: dense -> gelu -> out_proj fused (hidden never hits HBM)
# ----------------------------------------------------------------------------
def _ner_head_kernel(x_ref, w1_ref, b1_ref, w2_ref, b2_ref, o_ref):
    h = jnp.dot(x_ref[...].astype(w1_ref.dtype), w1_ref[...],
                preferred_element_type=jnp.float32) + b1_ref[...]
    h = jax.nn.gelu(h, approximate=True)   # see note in _fused_linear_kernel
    y = jnp.dot(h.astype(w2_ref.dtype), w2_ref[...],
                preferred_element_type=jnp.float32) + b2_ref[...]
    o_ref[...] = y.astype(o_ref.dtype)


def ner_head(x2d, w1, b1, w2, b2, *, tm):
    """dense(dim->2*dim) -> GELU -> out_proj(2*dim->L), hidden stays in VMEM.
    The label dim is padded to 128 lanes (zero weight cols, NEG_PAD bias) so the
    logits store and the CE load are lane-dense; padded columns vanish in the lse."""
    M, D = x2d.shape
    H2 = w1.shape[1]
    L = w2.shape[1]
    Lp = _round_up(L, 128)
    w2p = jnp.pad(w2.astype(w1.dtype), ((0, 0), (0, Lp - L)))
    b2p = jnp.pad(b2, ((0, Lp - L),), constant_values=NEG_PAD).reshape(1, Lp)
    assert M % tm == 0
    blk = tm * D * x2d.dtype.itemsize + (D * H2 + H2 * Lp) * 2 + tm * Lp * 4
    return pl.pallas_call(
        _ner_head_kernel,
        out_shape=jax.ShapeDtypeStruct((M, Lp), jnp.float32),
        grid=(M // tm,),
        in_specs=[pl.BlockSpec((tm, D), lambda i: (i, 0)),
                  pl.BlockSpec((D, H2), lambda i: (0, 0)),
                  pl.BlockSpec((1, H2), lambda i: (0, 0)),
                  pl.BlockSpec((H2, Lp), lambda i: (0, 0)),
                  pl.BlockSpec((1, Lp), lambda i: (0, 0))],
        out_specs=pl.BlockSpec((tm, Lp), lambda i: (i, 0)),
        compiler_params=pltpu.CompilerParams(
            dimension_semantics=("parallel",),
            vmem_limit_bytes=_vmem_limit(blk)),
    )(x2d, w1, b1.reshape(1, H2), w2p, b2p)        # (M, Lp) padded logits


# ----------------------------------------------------------------------------
# masked cross entropy (ignore_index = -100), reduced in-kernel
# ----------------------------------------------------------------------------
def _masked_ce_kernel(logits_ref, labels_ref, mask_ref, loss_ref, wgt_ref, lacc, wacc):
    i = pl.program_id(0)

    @pl.when(i == 0)
    def _init():
        lacc[...] = jnp.zeros(lacc.shape, lacc.dtype)
        wacc[...] = jnp.zeros(wacc.shape, wacc.dtype)

    logits = logits_ref[...]                          # (tm, Lp) f32, pads are NEG_PAD
    labels = labels_ref[...]                          # (tm, 1) int32
    mask = mask_ref[...]                              # (tm, 1) int32
    m = jnp.max(logits, axis=-1, keepdims=True)
    lse = m + jnp.log(jnp.sum(jnp.exp(logits - m), axis=-1, keepdims=True))
    col = jax.lax.broadcasted_iota(jnp.int32, logits.shape, 1)
    picked = jnp.sum(jnp.where(col == labels, logits, 0.0), axis=-1, keepdims=True)
    valid = jnp.logical_and(mask == 1, labels != -100)    # CrossEntropyLoss ignore_index
    lacc[...] += jnp.where(valid, lse - picked, 0.0)
    wacc[...] += valid.astype(jnp.float32)

    @pl.when(i == pl.num_programs(0) - 1)
    def _fin():
        loss_ref[...] = lacc[...]
        wgt_ref[...] = wacc[...]


def masked_cross_entropy(logits2d, labels_flat, mask_flat, *, tm):
    M, Lp = logits2d.shape
    assert M % tm == 0
    loss_sum, wgt_sum = pl.pallas_call(
        _masked_ce_kernel,
        out_shape=(jax.ShapeDtypeStruct((tm, 1), jnp.float32),
                   jax.ShapeDtypeStruct((tm, 1), jnp.float32)),
        grid=(M // tm,),
        in_specs=[pl.BlockSpec((tm, Lp), lambda i: (i, 0)),
                  pl.BlockSpec((tm, 1), lambda i: (i, 0)),
                  pl.BlockSpec((tm, 1), lambda i: (i, 0))],
        out_specs=(pl.BlockSpec((tm, 1), lambda i: (0, 0)),
                   pl.BlockSpec((tm, 1), lambda i: (0, 0))),
        scratch_shapes=[pltpu.VMEM((tm, 1), jnp.float32),
                        pltpu.VMEM((tm, 1), jnp.float32)],
        compiler_params=pltpu.CompilerParams(dimension_semantics=("arbitrary",)),
    )(logits2d, labels_flat.reshape(M, 1), mask_flat.reshape(M, 1))
    return jnp.sum(loss_sum) / jnp.sum(wgt_sum)     # mean over non-ignored tokens


# ----------------------------------------------------------------------------
# parameters & forward
# ----------------------------------------------------------------------------
def init_params(key, num_tokens, dim, depth, max_seq_len, heads, num_labels):
    std = 0.02
    wdt = jnp.bfloat16                 # MXU-friendly weight storage; biases / LN stay f32
    scale = (dim // heads) ** -0.5     # folded into the Q projection (weights + bias)

    keys = jax.random.split(key, 3 + depth)
    p = {
        "tok_emb": jax.random.normal(keys[0], (num_tokens, dim), jnp.float32) * std,
        "pos_emb": jax.random.normal(keys[1], (max_seq_len, dim), jnp.float32) * std,
        "layers": [],
    }
    for d in range(depth):
        lk = jax.random.split(keys[2 + d], 4)
        wqkv = jax.random.normal(lk[0], (3, dim, dim), jnp.float32) * std
        wqkv = wqkv.at[0].multiply(scale)                       # fold 1/sqrt(dh) into Q
        bqkv = jnp.zeros((3, dim), jnp.float32).at[0].multiply(scale)
        p["layers"].append(dict(
            ln1_g=jnp.ones((dim,), jnp.float32), ln1_b=jnp.zeros((dim,), jnp.float32),
            wqkv=wqkv.astype(wdt), bqkv=bqkv,
            wo=(jax.random.normal(lk[1], (dim, dim), jnp.float32) * std).astype(wdt),
            bo=jnp.zeros((dim,), jnp.float32),
            ln2_g=jnp.ones((dim,), jnp.float32), ln2_b=jnp.zeros((dim,), jnp.float32),
            w1=(jax.random.normal(lk[2], (dim, 4 * dim), jnp.float32) * std).astype(wdt),
            b1=jnp.zeros((4 * dim,), jnp.float32),
            w2=(jax.random.normal(lk[3], (4 * dim, dim), jnp.float32) * std).astype(wdt),
            b2=jnp.zeros((dim,), jnp.float32),
        ))
    kh = jax.random.split(keys[2 + depth], 2)
    p["ner_w1"] = (jax.random.normal(kh[0], (dim, 2 * dim), jnp.float32) * std).astype(wdt)
    p["ner_b1"] = jnp.zeros((2 * dim,), jnp.float32)
    p["ner_w2"] = (jax.random.normal(kh[1], (2 * dim, num_labels), jnp.float32) * std).astype(wdt)
    p["ner_b2"] = jnp.zeros((num_labels,), jnp.float32)
    return p


def reformer_ner_forward(params, input_ids, attention_mask=None, labels=None,
                         *, dim, heads, num_labels):
    B, S = input_ids.shape
    M = B * S
    # One-time row padding to a tile multiple (no per-call pad/slice in the layer loop).
    TM = _pick_tile(M, (256, 128, 64, 32, 16, 8), _round_up(min(M, 256), 8))
    Mp = _round_up(M, TM)

    # --- backbone (ReformerLM, return_embeddings=True) ---
    # TODO(synk): axial positional embedding approximated with a learned absolute table;
    # token gather stays in XLA.
    x2d = (params["tok_emb"][input_ids] + params["pos_emb"][None, :S, :]).reshape(M, dim)
    if Mp != M:
        x2d = jnp.pad(x2d, ((0, Mp - M), (0, 0)))

    for layer in params["layers"]:
        # attention sub-block: LN -> fused QKV (bf16, scale folded into Q) ->
        # flash attention -> out-proj (+residual).  attention_mask is intentionally NOT
        # applied here: the reference model never forwards it into the backbone.
        qkv = fused_linear(x2d, layer["wqkv"], layer["bqkv"], tm=TM,
                           gamma=layer["ln1_g"], beta=layer["ln1_b"],
                           out_dtype=jnp.bfloat16)                   # (3, Mp, dim)
        qkv4 = (qkv if Mp == M else qkv[:, :M, :]).reshape(3, B, S, dim)
        attn = flash_attention(qkv4, heads).reshape(M, dim)          # (M, dim) bf16
        if Mp != M:
            attn = jnp.pad(attn, ((0, Mp - M), (0, 0)))
        x2d = fused_linear(attn, layer["wo"], layer["bo"], tm=TM, residual=x2d)
        # feed-forward sub-block: LN -> W1 + GELU -> W2 (+residual)
        h = fused_linear(x2d, layer["w1"], layer["b1"], tm=TM,
                         gamma=layer["ln2_g"], beta=layer["ln2_b"],
                         act="gelu", out_dtype=jnp.bfloat16)
        x2d = fused_linear(h, layer["w2"], layer["b2"], tm=TM, residual=x2d)

    # --- NER head: dropout(id) -> dense -> gelu -> dropout(id) -> out_proj ---
    logits_p = ner_head(x2d, params["ner_w1"], params["ner_b1"],
                        params["ner_w2"], params["ner_b2"], tm=TM)   # (Mp, 128) padded
    if labels is None:
        return logits_p[:M, :num_labels].reshape(B, S, num_labels)

    labels_f = labels.reshape(-1).astype(jnp.int32)
    mask_f = (jnp.ones((M,), jnp.int32) if attention_mask is None
              else attention_mask.reshape(-1).astype(jnp.int32))
    if Mp != M:
        labels_f = jnp.pad(labels_f, (0, Mp - M), constant_values=-100)
        mask_f = jnp.pad(mask_f, (0, Mp - M))
    return masked_cross_entropy(logits_p, labels_f, mask_f, tm=TM)


# ----------------------------------------------------------------------------
# Main
# ----------------------------------------------------------------------------
if __name__ == "__main__":
    num_tokens, dim, depth, max_seq_len, heads, num_labels = 100, 32, 2, 8, 4, 2
    B, S = 2, 8

    key = jax.random.PRNGKey(0)
    kp, ki, kl = jax.random.split(key, 3)

    params = init_params(kp, num_tokens, dim, depth, max_seq_len, heads, num_labels)

    input_ids = jax.random.randint(ki, (B, S), 0, num_tokens, dtype=jnp.int32)
    labels = jax.random.randint(kl, (B, S), 0, num_labels, dtype=jnp.int32)
    attention_mask = jnp.ones((B, S), jnp.int32).at[1, 6:].set(0)

    fwd = functools.partial(reformer_ner_forward, dim=dim, heads=heads,
                            num_labels=num_labels)
    logits_fn = jax.jit(lambda p, ids: fwd(p, ids))
    loss_fn = jax.jit(lambda p, ids, am, lab: fwd(p, ids, attention_mask=am, labels=lab))

    # logits path (no labels)
    logits = jax.block_until_ready(logits_fn(params, input_ids))
    assert logits.shape == (B, S, num_labels)
    assert bool(jnp.all(jnp.isfinite(logits)))

    # loss path (labels + attention_mask)
    loss = jax.block_until_ready(loss_fn(params, input_ids, attention_mask, labels))
    assert loss.shape == ()
    assert bool(jnp.isfinite(loss))

    print("KERNEL_OK")
</pallas_src>

<mosaic_0001>
module attributes {stable_mosaic.version = 11 : i64} {
  func.func @_fused_linear_kernel(%arg0: i32, %arg1: memref<16x32xf32, #tpu.memory_space<vmem>>, %arg2: memref<1x32xf32, #tpu.memory_space<vmem>>, %arg3: memref<1x32xf32, #tpu.memory_space<vmem>>, %arg4: memref<3x32x32xbf16, #tpu.memory_space<vmem>>, %arg5: memref<3x1x32xf32, #tpu.memory_space<vmem>>, %arg6: memref<3x16x32xbf16, #tpu.memory_space<vmem>>) attributes {dimension_semantics = [#tpu.dimension_semantics<parallel>], iteration_bounds = array<i64: 1>, scalar_prefetch = 0 : i64, scratch_operands = 0 : i64, tpu.core_type = #tpu.core_type<tc>, window_params = [{transform_indices = @transform_0, window_bounds = array<i64: 16, 32>}, {pipeline_mode = #tpu.pipeline_mode<synchronous>, transform_indices = @transform_1, window_bounds = array<i64: 1, 32>}, {pipeline_mode = #tpu.pipeline_mode<synchronous>, transform_indices = @transform_2, window_bounds = array<i64: 1, 32>}, {pipeline_mode = #tpu.pipeline_mode<synchronous>, transform_indices = @transform_3, window_bounds = array<i64: 3, 32, 32>}, {pipeline_mode = #tpu.pipeline_mode<synchronous>, transform_indices = @transform_4, window_bounds = array<i64: 3, 1, 32>}, {transform_indices = @transform_5, window_bounds = array<i64: 3, 16, 32>}]} {
    %c0 = arith.constant 0 : index
    %c0_0 = arith.constant 0 : index
    %0 = vector.load %arg1[%c0, %c0_0] : memref<16x32xf32, #tpu.memory_space<vmem>>, vector<16x32xf32>
    %cst = arith.constant dense<0.000000e+00> : vector<16xf32>
    %1 = vector.multi_reduction <add>, %0, %cst [1] : vector<16x32xf32> to vector<16xf32>
    %2 = vector.shape_cast %1 : vector<16xf32> to vector<16x1xf32>
    %cst_1 = arith.constant 3.200000e+01 : f32
    %3 = vector.broadcast %cst_1 : f32 to vector<16x1xf32>
    %4 = arith.divf %2, %3 : vector<16x1xf32>
    %5 = vector.broadcast %4 : vector<16x1xf32> to vector<16x32xf32>
    %6 = arith.subf %0, %5 : vector<16x32xf32>
    %7 = arith.mulf %6, %6 : vector<16x32xf32>
    %cst_2 = arith.constant dense<0.000000e+00> : vector<16xf32>
    %8 = vector.multi_reduction <add>, %7, %cst_2 [1] : vector<16x32xf32> to vector<16xf32>
    %9 = vector.shape_cast %8 : vector<16xf32> to vector<16x1xf32>
    %cst_3 = arith.constant 3.200000e+01 : f32
    %10 = vector.broadcast %cst_3 : f32 to vector<16x1xf32>
    %11 = arith.divf %9, %10 : vector<16x1xf32>
    %12 = vector.broadcast %4 : vector<16x1xf32> to vector<16x32xf32>
    %13 = arith.subf %0, %12 : vector<16x32xf32>
    %cst_4 = arith.constant 9.99999974E-6 : f32
    %14 = vector.broadcast %cst_4 : f32 to vector<16x1xf32>
    %15 = arith.addf %11, %14 : vector<16x1xf32>
    %16 = math.rsqrt %15 : vector<16x1xf32>
    %17 = vector.broadcast %16 : vector<16x1xf32> to vector<16x32xf32>
    %18 = arith.mulf %13, %17 : vector<16x32xf32>
    %c0_5 = arith.constant 0 : index
    %c0_6 = arith.constant 0 : index
    %19 = vector.load %arg2[%c0_5, %c0_6] : memref<1x32xf32, #tpu.memory_space<vmem>>, vector<1x32xf32>
    %20 = vector.broadcast %19 : vector<1x32xf32> to vector<16x32xf32>
    %21 = arith.mulf %18, %20 : vector<16x32xf32>
    %c0_7 = arith.constant 0 : index
    %c0_8 = arith.constant 0 : index
    %22 = vector.load %arg3[%c0_7, %c0_8] : memref<1x32xf32, #tpu.memory_space<vmem>>, vector<1x32xf32>
    %23 = vector.broadcast %22 : vector<1x32xf32> to vector<16x32xf32>
    %24 = arith.addf %21, %23 : vector<16x32xf32>
    %25 = arith.truncf %24 : vector<16x32xf32> to vector<16x32xbf16>
    %c0_9 = arith.constant 0 : index
    %c0_10 = arith.constant 0 : index
    %c0_11 = arith.constant 0 : index
    %26 = vector.load %arg4[%c0_9, %c0_10, %c0_11] : memref<3x32x32xbf16, #tpu.memory_space<vmem>>, vector<1x32x32xbf16>
    %27 = vector.shape_cast %26 : vector<1x32x32xbf16> to vector<32x32xbf16>
    %cst_12 = arith.constant dense<0.000000e+00> : vector<16x32xf32>
    %28 = tpu.matmul %25, %27, %cst_12 {dimension_numbers = #tpu.dot_dimension_numbers<[1], [0], [0], [1], [0, 0, 1, 1], [], []>} : vector<16x32xbf16>, vector<32x32xbf16>, vector<16x32xf32> -> vector<16x32xf32>
    %c0_13 = arith.constant 0 : index
    %c0_14 = arith.constant 0 : index
    %c0_15 = arith.constant 0 : index
    %29 = vector.load %arg5[%c0_13, %c0_14, %c0_15] : memref<3x1x32xf32, #tpu.memory_space<vmem>>, vector<1x1x32xf32>
    %30 = vector.shape_cast %29 : vector<1x1x32xf32> to vector<1x32xf32>
    %31 = vector.broadcast %30 : vector<1x32xf32> to vector<16x32xf32>
    %32 = arith.addf %28, %31 : vector<16x32xf32>
    %33 = arith.truncf %32 : vector<16x32xf32> to vector<16x32xbf16>
    %c0_16 = arith.constant 0 : index
    %c0_17 = arith.constant 0 : index
    %c0_18 = arith.constant 0 : index
    %34 = vector.load %arg6[%c0_16, %c0_17, %c0_18] : memref<3x16x32xbf16, #tpu.memory_space<vmem>>, vector<1x16x32xbf16>
    %35 = vector.shape_cast %34 : vector<1x16x32xbf16> to vector<16x32xbf16>
    %36 = vector.shape_cast %33 : vector<16x32xbf16> to vector<1x16x32xbf16>
    tpu.vector_store %arg6[%c0_16, %c0_17, %c0_18], %36 {strides = array<i32>} : memref<3x16x32xbf16, #tpu.memory_space<vmem>>, vector<1x16x32xbf16>,
    %c1 = arith.constant 1 : index
    %c0_19 = arith.constant 0 : index
    %c0_20 = arith.constant 0 : index
    %37 = vector.load %arg4[%c1, %c0_19, %c0_20] : memref<3x32x32xbf16, #tpu.memory_space<vmem>>, vector<1x32x32xbf16>
    %38 = vector.shape_cast %37 : vector<1x32x32xbf16> to vector<32x32xbf16>
    %cst_21 = arith.constant dense<0.000000e+00> : vector<16x32xf32>
    %39 = tpu.matmul %25, %38, %cst_21 {dimension_numbers = #tpu.dot_dimension_numbers<[1], [0], [0], [1], [0, 0, 1, 1], [], []>} : vector<16x32xbf16>, vector<32x32xbf16>, vector<16x32xf32> -> vector<16x32xf32>
    %c1_22 = arith.constant 1 : index
    %c0_23 = arith.constant 0 : index
    %c0_24 = arith.constant 0 : index
    %40 = vector.load %arg5[%c1_22, %c0_23, %c0_24] : memref<3x1x32xf32, #tpu.memory_space<vmem>>, vector<1x1x32xf32>
    %41 = vector.shape_cast %40 : vector<1x1x32xf32> to vector<1x32xf32>
    %42 = vector.broadcast %41 : vector<1x32xf32> to vector<16x32xf32>
    %43 = arith.addf %39, %42 : vector<16x32xf32>
    %44 = arith.truncf %43 : vector<16x32xf32> to vector<16x32xbf16>
    %c1_25 = arith.constant 1 : index
    %c0_26 = arith.constant 0 : index
    %c0_27 = arith.constant 0 : index
    %45 = vector.load %arg6[%c1_25, %c0_26, %c0_27] : memref<3x16x32xbf16, #tpu.memory_space<vmem>>, vector<1x16x32xbf16>
    %46 = vector.shape_cast %45 : vector<1x16x32xbf16> to vector<16x32xbf16>
    %47 = vector.shape_cast %44 : vector<16x32xbf16> to vector<1x16x32xbf16>
    tpu.vector_store %arg6[%c1_25, %c0_26, %c0_27], %47 {strides = array<i32>} : memref<3x16x32xbf16, #tpu.memory_space<vmem>>, vector<1x16x32xbf16>,
    %c2 = arith.constant 2 : index
    %c0_28 = arith.constant 0 : index
    %c0_29 = arith.constant 0 : index
    %48 = vector.load %arg4[%c2, %c0_28, %c0_29] : memref<3x32x32xbf16, #tpu.memory_space<vmem>>, vector<1x32x32xbf16>
    %49 = vector.shape_cast %48 : vector<1x32x32xbf16> to vector<32x32xbf16>
    %cst_30 = arith.constant dense<0.000000e+00> : vector<16x32xf32>
    %50 = tpu.matmul %25, %49, %cst_30 {dimension_numbers = #tpu.dot_dimension_numbers<[1], [0], [0], [1], [0, 0, 1, 1], [], []>} : vector<16x32xbf16>, vector<32x32xbf16>, vector<16x32xf32> -> vector<16x32xf32>
    %c2_31 = arith.constant 2 : index
    %c0_32 = arith.constant 0 : index
    %c0_33 = arith.constant 0 : index
    %51 = vector.load %arg5[%c2_31, %c0_32, %c0_33] : memref<3x1x32xf32, #tpu.memory_space<vmem>>, vector<1x1x32xf32>
    %52 = vector.shape_cast %51 : vector<1x1x32xf32> to vector<1x32xf32>
    %53 = vector.broadcast %52 : vector<1x32xf32> to vector<16x32xf32>
    %54 = arith.addf %50, %53 : vector<16x32xf32>
    %55 = arith.truncf %54 : vector<16x32xf32> to vector<16x32xbf16>
    %c2_34 = arith.constant 2 : index
    %c0_35 = arith.constant 0 : index
    %c0_36 = arith.constant 0 : index
    %56 = vector.load %arg6[%c2_34, %c0_35, %c0_36] : memref<3x16x32xbf16, #tpu.memory_space<vmem>>, vector<1x16x32xbf16>
    %57 = vector.shape_cast %56 : vector<1x16x32xbf16> to vector<16x32xbf16>
    %58 = vector.shape_cast %55 : vector<16x32xbf16> to vector<1x16x32xbf16>
    tpu.vector_store %arg6[%c2_34, %c0_35, %c0_36], %58 {strides = array<i32>} : memref<3x16x32xbf16, #tpu.memory_space<vmem>>, vector<1x16x32xbf16>,
    return
  }
  func.func @transform_0(%arg0: i32) -> (i32, i32) {
    %c0_i32 = arith.constant 0 : i32
    %c0_i32_0 = arith.constant 0 : i32
    return %arg0, %c0_i32 : i32, i32
  }
  func.func @transform_1(%arg0: i32) -> (i32, i32) {
    %c0_i32 = arith.constant 0 : i32
    %c0_i32_0 = arith.constant 0 : i32
    %c0_i32_1 = arith.constant 0 : i32
    return %c0_i32, %c0_i32_0 : i32, i32
  }
  func.func @transform_2(%arg0: i32) -> (i32, i32) {
    %c0_i32 = arith.constant 0 : i32
    %c0_i32_0 = arith.constant 0 : i32
    %c0_i32_1 = arith.constant 0 : i32
    return %c0_i32, %c0_i32_0 : i32, i32
  }
  func.func @transform_3(%arg0: i32) -> (i32, i32, i32) {
    %c0_i32 = arith.constant 0 : i32
    %c0_i32_0 = arith.constant 0 : i32
    %c0_i32_1 = arith.constant 0 : i32
    %c0_i32_2 = arith.constant 0 : i32
    return %c0_i32, %c0_i32_0, %c0_i32_1 : i32, i32, i32
  }
  func.func @transform_4(%arg0: i32) -> (i32, i32, i32) {
    %c0_i32 = arith.constant 0 : i32
    %c0_i32_0 = arith.constant 0 : i32
    %c0_i32_1 = arith.constant 0 : i32
    %c0_i32_2 = arith.constant 0 : i32
    return %c0_i32, %c0_i32_0, %c0_i32_1 : i32, i32, i32
  }
  func.func @transform_5(%arg0: i32) -> (i32, i32, i32) {
    %c0_i32 = arith.constant 0 : i32
    %c0_i32_0 = arith.constant 0 : i32
    %c0_i32_1 = arith.constant 0 : i32
    return %c0_i32, %arg0, %c0_i32_0 : i32, i32, i32
  }
}

module attributes {stable_mosaic.version = 11 : i64} {
  func.func @_flash_attn_kernel(%arg0: i32, %arg1: i32, %arg2: i32, %arg3: memref<1x1x8x32xbf16, #tpu.memory_space<vmem>>, %arg4: memref<1x1x8x32xbf16, #tpu.memory_space<vmem>>, %arg5: memref<1x1x8x32xbf16, #tpu.memory_space<vmem>>, %arg6: memref<1x8x32xbf16, #tpu.memory_space<vmem>>, %arg7: memref<4x8x1xf32, #tpu.memory_space<vmem>>, %arg8: memref<4x8x1xf32, #tpu.memory_space<vmem>>, %arg9: memref<4x8x8xf32, #tpu.memory_space<vmem>>) attributes {dimension_semantics = [#tpu.dimension_semantics<parallel>, #tpu.dimension_semantics<parallel>, #tpu.dimension_semantics<arbitrary>], iteration_bounds = array<i64: 2, 1, 1>, scalar_prefetch = 0 : i64, scratch_operands = 3 : i64, tpu.core_type = #tpu.core_type<tc>, window_params = [{transform_indices = @transform_0, window_bounds = array<i64: 1, 1, 8, 32>}, {transform_indices = @transform_1, window_bounds = array<i64: 1, 1, 8, 32>}, {transform_indices = @transform_2, window_bounds = array<i64: 1, 1, 8, 32>}, {transform_indices = @transform_3, window_bounds = array<i64: 1, 8, 32>}]} {
    %c0_i32 = arith.constant 0 : i32
    %0 = arith.cmpi eq, %arg2, %c0_i32 : i32
    %1 = arith.extui %0 : i1 to i32
    %c0_i32_0 = arith.constant 0 : i32
    %2 = arith.cmpi ne, %1, %c0_i32_0 : i32
    scf.if %2 {
      %cst_131 = arith.constant 0xFF800000 : f32
      %162 = vector.broadcast %cst_131 : f32 to vector<4x8x1xf32>
      %c0_132 = arith.constant 0 : index
      %c0_133 = arith.constant 0 : index
      %c0_134 = arith.constant 0 : index
      %163 = vector.load %arg7[%c0_132, %c0_133, %c0_134] : memref<4x8x1xf32, #tpu.memory_space<vmem>>, vector<4x8x1xf32>
      tpu.vector_store %arg7[%c0_132, %c0_133, %c0_134], %162 {strides = array<i32>} : memref<4x8x1xf32, #tpu.memory_space<vmem>>, vector<4x8x1xf32>,
      %cst_135 = arith.constant 0.000000e+00 : f32
      %164 = vector.broadcast %cst_135 : f32 to vector<4x8x1xf32>
      %c0_136 = arith.constant 0 : index
      %c0_137 = arith.constant 0 : index
      %c0_138 = arith.constant 0 : index
      %165 = vector.load %arg8[%c0_136, %c0_137, %c0_138] : memref<4x8x1xf32, #tpu.memory_space<vmem>>, vector<4x8x1xf32>
      tpu.vector_store %arg8[%c0_136, %c0_137, %c0_138], %164 {strides = array<i32>} : memref<4x8x1xf32, #tpu.memory_space<vmem>>, vector<4x8x1xf32>,
      %cst_139 = arith.constant 0.000000e+00 : f32
      %166 = vector.broadcast %cst_139 : f32 to vector<4x8x8xf32>
      %c0_140 = arith.constant 0 : index
      %c0_141 = arith.constant 0 : index
      %c0_142 = arith.constant 0 : index
      %167 = vector.load %arg9[%c0_140, %c0_141, %c0_142] : memref<4x8x8xf32, #tpu.memory_space<vmem>>, vector<4x8x8xf32>
      tpu.vector_store %arg9[%c0_140, %c0_141, %c0_142], %166 {strides = array<i32>} : memref<4x8x8xf32, #tpu.memory_space<vmem>>, vector<4x8x8xf32>,
    } else {
    }
    %c0 = arith.constant 0 : index
    %c0_1 = arith.constant 0 : index
    %c0_2 = arith.constant 0 : index
    %c0_3 = arith.constant 0 : index
    %3 = vector.load %arg3[%c0, %c0_1, %c0_2, %c0_3] : memref<1x1x8x32xbf16, #tpu.memory_space<vmem>>, vector<1x1x8x8xbf16>
    %4 = vector.shape_cast %3 : vector<1x1x8x8xbf16> to vector<8x8xbf16>
    %c0_4 = arith.constant 0 : index
    %c0_5 = arith.constant 0 : index
    %c0_6 = arith.constant 0 : index
    %c0_7 = arith.constant 0 : index
    %5 = vector.load %arg4[%c0_4, %c0_5, %c0_6, %c0_7] : memref<1x1x8x32xbf16, #tpu.memory_space<vmem>>, vector<1x1x8x8xbf16>
    %6 = vector.shape_cast %5 : vector<1x1x8x8xbf16> to vector<8x8xbf16>
    %c0_8 = arith.constant 0 : index
    %c0_9 = arith.constant 0 : index
    %c0_10 = arith.constant 0 : index
    %c0_11 = arith.constant 0 : index
    %7 = vector.load %arg5[%c0_8, %c0_9, %c0_10, %c0_11] : memref<1x1x8x32xbf16, #tpu.memory_space<vmem>>, vector<1x1x8x8xbf16>
    %8 = vector.shape_cast %7 : vector<1x1x8x8xbf16> to vector<8x8xbf16>
    %cst = arith.constant dense<0.000000e+00> : vector<8x8xf32>
    %9 = tpu.matmul %4, %6, %cst {dimension_numbers = #tpu.dot_dimension_numbers<[1], [1], [0], [0], [0, 0, 1, 0], [], []>} : vector<8x8xbf16>, vector<8x8xbf16>, vector<8x8xf32> -> vector<8x8xf32>
    %c0_12 = arith.constant 0 : index
    %c0_13 = arith.constant 0 : index
    %c0_14 = arith.constant 0 : index
    %10 = vector.load %arg7[%c0_12, %c0_13, %c0_14] : memref<4x8x1xf32, #tpu.memory_space<vmem>>, vector<1x8x1xf32>
    %11 = vector.shape_cast %10 : vector<1x8x1xf32> to vector<8x1xf32>
    %cst_15 = arith.constant dense<0xFF800000> : vector<8xf32>
    %12 = vector.multi_reduction <maximumf>, %9, %cst_15 [1] : vector<8x8xf32> to vector<8xf32>
    %13 = vector.shape_cast %12 : vector<8xf32> to vector<8x1xf32>
    %14 = arith.maximumf %11, %13 : vector<8x1xf32>
    %15 = arith.subf %11, %14 : vector<8x1xf32>
    %16 = math.exp %15 : vector<8x1xf32>
    %17 = vector.broadcast %14 : vector<8x1xf32> to vector<8x8xf32>
    %18 = arith.subf %9, %17 : vector<8x8xf32>
    %19 = math.exp %18 : vector<8x8xf32>
    %c0_16 = arith.constant 0 : index
    %c0_17 = arith.constant 0 : index
    %c0_18 = arith.constant 0 : index
    %20 = vector.load %arg8[%c0_16, %c0_17, %c0_18] : memref<4x8x1xf32, #tpu.memory_space<vmem>>, vector<1x8x1xf32>
    %21 = vector.shape_cast %20 : vector<1x8x1xf32> to vector<8x1xf32>
    %22 = arith.mulf %16, %21 : vector<8x1xf32>
    %cst_19 = arith.constant dense<0.000000e+00> : vector<8xf32>
    %23 = vector.multi_reduction <add>, %19, %cst_19 [1] : vector<8x8xf32> to vector<8xf32>
    %24 = vector.shape_cast %23 : vector<8xf32> to vector<8x1xf32>
    %25 = arith.addf %22, %24 : vector<8x1xf32>
    %c0_20 = arith.constant 0 : index
    %c0_21 = arith.constant 0 : index
    %c0_22 = arith.constant 0 : index
    %26 = vector.load %arg8[%c0_20, %c0_21, %c0_22] : memref<4x8x1xf32, #tpu.memory_space<vmem>>, vector<1x8x1xf32>
    %27 = vector.shape_cast %26 : vector<1x8x1xf32> to vector<8x1xf32>
    %28 = vector.shape_cast %25 : vector<8x1xf32> to vector<1x8x1xf32>
    tpu.vector_store %arg8[%c0_20, %c0_21, %c0_22], %28 {strides = array<i32>} : memref<4x8x1xf32, #tpu.memory_space<vmem>>, vector<1x8x1xf32>,
    %c0_23 = arith.constant 0 : index
    %c0_24 = arith.constant 0 : index
    %c0_25 = arith.constant 0 : index
    %29 = vector.load %arg9[%c0_23, %c0_24, %c0_25] : memref<4x8x8xf32, #tpu.memory_space<vmem>>, vector<1x8x8xf32>
    %30 = vector.shape_cast %29 : vector<1x8x8xf32> to vector<8x8xf32>
    %31 = vector.broadcast %16 : vector<8x1xf32> to vector<8x8xf32>
    %32 = arith.mulf %31, %30 : vector<8x8xf32>
    %33 = arith.truncf %19 : vector<8x8xf32> to vector<8x8xbf16>
    %cst_26 = arith.constant dense<0.000000e+00> : vector<8x8xf32>
    %34 = tpu.matmul %33, %8, %cst_26 {dimension_numbers = #tpu.dot_dimension_numbers<[1], [0], [0], [1], [0, 0, 1, 1], [], []>} : vector<8x8xbf16>, vector<8x8xbf16>, vector<8x8xf32> -> vector<8x8xf32>
    %35 = arith.addf %32, %34 : vector<8x8xf32>
    %c0_27 = arith.constant 0 : index
    %c0_28 = arith.constant 0 : index
    %c0_29 = arith.constant 0 : index
    %36 = vector.load %arg9[%c0_27, %c0_28, %c0_29] : memref<4x8x8xf32, #tpu.memory_space<vmem>>, vector<1x8x8xf32>
    %37 = vector.shape_cast %36 : vector<1x8x8xf32> to vector<8x8xf32>
    %38 = vector.shape_cast %35 : vector<8x8xf32> to vector<1x8x8xf32>
    tpu.vector_store %arg9[%c0_27, %c0_28, %c0_29], %38 {strides = array<i32>} : memref<4x8x8xf32, #tpu.memory_space<vmem>>, vector<1x8x8xf32>,
    %c0_30 = arith.constant 0 : index
    %c0_31 = arith.constant 0 : index
    %c0_32 = arith.constant 0 : index
    %39 = vector.load %arg7[%c0_30, %c0_31, %c0_32] : memref<4x8x1xf32, #tpu.memory_space<vmem>>, vector<1x8x1xf32>
    %40 = vector.shape_cast %39 : vector<1x8x1xf32> to vector<8x1xf32>
    %41 = vector.shape_cast %14 : vector<8x1xf32> to vector<1x8x1xf32>
    tpu.vector_store %arg7[%c0_30, %c0_31, %c0_32], %41 {strides = array<i32>} : memref<4x8x1xf32, #tpu.memory_space<vmem>>, vector<1x8x1xf32>,
    %c0_33 = arith.constant 0 : index
    %c0_34 = arith.constant 0 : index
    %c0_35 = arith.constant 0 : index
    %c8 = arith.constant 8 : index
    %42 = vector.load %arg3[%c0_33, %c0_34, %c0_35, %c8] : memref<1x1x8x32xbf16, #tpu.memory_space<vmem>>, vector<1x1x8x8xbf16>
    %43 = vector.shape_cast %42 : vector<1x1x8x8xbf16> to vector<8x8xbf16>
    %c0_36 = arith.constant 0 : index
    %c0_37 = arith.constant 0 : index
    %c0_38 = arith.constant 0 : index
    %c8_39 = arith.constant 8 : index
    %44 = vector.load %arg4[%c0_36, %c0_37, %c0_38, %c8_39] : memref<1x1x8x32xbf16, #tpu.memory_space<vmem>>, vector<1x1x8x8xbf16>
    %45 = vector.shape_cast %44 : vector<1x1x8x8xbf16> to vector<8x8xbf16>
    %c0_40 = arith.constant 0 : index
    %c0_41 = arith.constant 0 : index
    %c0_42 = arith.constant 0 : index
    %c8_43 = arith.constant 8 : index
    %46 = vector.load %arg5[%c0_40, %c0_41, %c0_42, %c8_43] : memref<1x1x8x32xbf16, #tpu.memory_space<vmem>>, vector<1x1x8x8xbf16>
    %47 = vector.shape_cast %46 : vector<1x1x8x8xbf16> to vector<8x8xbf16>
    %cst_44 = arith.constant dense<0.000000e+00> : vector<8x8xf32>
    %48 = tpu.matmul %43, %45, %cst_44 {dimension_numbers = #tpu.dot_dimension_numbers<[1], [1], [0], [0], [0, 0, 1, 0], [], []>} : vector<8x8xbf16>, vector<8x8xbf16>, vector<8x8xf32> -> vector<8x8xf32>
    %c1 = arith.constant 1 : index
    %c0_45 = arith.constant 0 : index
    %c0_46 = arith.constant 0 : index
    %49 = vector.load %arg7[%c1, %c0_45, %c0_46] : memref<4x8x1xf32, #tpu.memory_space<vmem>>, vector<1x8x1xf32>
    %50 = vector.shape_cast %49 : vector<1x8x1xf32> to vector<8x1xf32>
    %cst_47 = arith.constant dense<0xFF800000> : vector<8xf32>
    %51 = vector.multi_reduction <maximumf>, %48, %cst_47 [1] : vector<8x8xf32> to vector<8xf32>
    %52 = vector.shape_cast %51 : vector<8xf32> to vector<8x1xf32>
    %53 = arith.maximumf %50, %52 : vector<8x1xf32>
    %54 = arith.subf %50, %53 : vector<8x1xf32>
    %55 = math.exp %54 : vector<8x1xf32>
    %56 = vector.broadcast %53 : vector<8x1xf32> to vector<8x8xf32>
    %57 = arith.subf %48, %56 : vector<8x8xf32>
    %58 = math.exp %57 : vector<8x8xf32>
    %c1_48 = arith.constant 1 : index
    %c0_49 = arith.constant 0 : index
    %c0_50 = arith.constant 0 : index
    %59 = vector.load %arg8[%c1_48, %c0_49, %c0_50] : memref<4x8x1xf32, #tpu.memory_space<vmem>>, vector<1x8x1xf32>
    %60 = vector.shape_cast %59 : vector<1x8x1xf32> to vector<8x1xf32>
    %61 = arith.mulf %55, %60 : vector<8x1xf32>
    %cst_51 = arith.constant dense<0.000000e+00> : vector<8xf32>
    %62 = vector.multi_reduction <add>, %58, %cst_51 [1] : vector<8x8xf32> to vector<8xf32>
    %63 = vector.shape_cast %62 : vector<8xf32> to vector<8x1xf32>
    %64 = arith.addf %61, %63 : vector<8x1xf32>
    %c1_52 = arith.constant 1 : index
    %c0_53 = arith.constant 0 : index
    %c0_54 = arith.constant 0 : index
    %65 = vector.load %arg8[%c1_52, %c0_53, %c0_54] : memref<4x8x1xf32, #tpu.memory_space<vmem>>, vector<1x8x1xf32>
    %66 = vector.shape_cast %65 : vector<1x8x1xf32> to vector<8x1xf32>
    %67 = vector.shape_cast %64 : vector<8x1xf32> to vector<1x8x1xf32>
    tpu.vector_store %arg8[%c1_52, %c0_53, %c0_54], %67 {strides = array<i32>} : memref<4x8x1xf32, #tpu.memory_space<vmem>>, vector<1x8x1xf32>,
    %c1_55 = arith.constant 1 : index
    %c0_56 = arith.constant 0 : index
    %c0_57 = arith.constant 0 : index
    %68 = vector.load %arg9[%c1_55, %c0_56, %c0_57] : memref<4x8x8xf32, #tpu.memory_space<vmem>>, vector<1x8x8xf32>
    %69 = vector.shape_cast %68 : vector<1x8x8xf32> to vector<8x8xf32>
    %70 = vector.broadcast %55 : vector<8x1xf32> to vector<8x8xf32>
    %71 = arith.mulf %70, %69 : vector<8x8xf32>
    %72 = arith.truncf %58 : vector<8x8xf32> to vector<8x8xbf16>
    %cst_58 = arith.constant dense<0.000000e+00> : vector<8x8xf32>
    %73 = tpu.matmul %72, %47, %cst_58 {dimension_numbers = #tpu.dot_dimension_numbers<[1], [0], [0], [1], [0, 0, 1, 1], [], []>} : vector<8x8xbf16>, vector<8x8xbf16>, vector<8x8xf32> -> vector<8x8xf32>
    %74 = arith.addf %71, %73 : vector<8x8xf32>
    %c1_59 = arith.constant 1 : index
    %c0_60 = arith.constant 0 : index
    %c0_61 = arith.constant 0 : index
    %75 = vector.load %arg9[%c1_59, %c0_60, %c0_61] : memref<4x8x8xf32, #tpu.memory_space<vmem>>, vector<1x8x8xf32>
    %76 = vector.shape_cast %75 : vector<1x8x8xf32> to vector<8x8xf32>
    %77 = vector.shape_cast %74 : vector<8x8xf32> to vector<1x8x8xf32>
    tpu.vector_store %arg9[%c1_59, %c0_60, %c0_61], %77 {strides = array<i32>} : memref<4x8x8xf32, #tpu.memory_space<vmem>>, vector<1x8x8xf32>,
    %c1_62 = arith.constant 1 : index
    %c0_63 = arith.constant 0 : index
    %c0_64 = arith.constant 0 : index
    %78 = vector.load %arg7[%c1_62, %c0_63, %c0_64] : memref<4x8x1xf32, #tpu.memory_space<vmem>>, vector<1x8x1xf32>
    %79 = vector.shape_cast %78 : vector<1x8x1xf32> to vector<8x1xf32>
    %80 = vector.shape_cast %53 : vector<8x1xf32> to vector<1x8x1xf32>
    tpu.vector_store %arg7[%c1_62, %c0_63, %c0_64], %80 {strides = array<i32>} : memref<4x8x1xf32, #tpu.memory_space<vmem>>, vector<1x8x1xf32>,
    %c0_65 = arith.constant 0 : index
    %c0_66 = arith.constant 0 : index
    %c0_67 = arith.constant 0 : index
    %c16 = arith.constant 16 : index
    %81 = vector.load %arg3[%c0_65, %c0_66, %c0_67, %c16] : memref<1x1x8x32xbf16, #tpu.memory_space<vmem>>, vector<1x1x8x8xbf16>
    %82 = vector.shape_cast %81 : vector<1x1x8x8xbf16> to vector<8x8xbf16>
    %c0_68 = arith.constant 0 : index
    %c0_69 = arith.constant 0 : index
    %c0_70 = arith.constant 0 : index
    %c16_71 = arith.constant 16 : index
    %83 = vector.load %arg4[%c0_68, %c0_69, %c0_70, %c16_71] : memref<1x1x8x32xbf16, #tpu.memory_space<vmem>>, vector<1x1x8x8xbf16>
    %84 = vector.shape_cast %83 : vector<1x1x8x8xbf16> to vector<8x8xbf16>
    %c0_72 = arith.constant 0 : index
    %c0_73 = arith.constant 0 : index
    %c0_74 = arith.constant 0 : index
    %c16_75 = arith.constant 16 : index
    %85 = vector.load %arg5[%c0_72, %c0_73, %c0_74, %c16_75] : memref<1x1x8x32xbf16, #tpu.memory_space<vmem>>, vector<1x1x8x8xbf16>
    %86 = vector.shape_cast %85 : vector<1x1x8x8xbf16> to vector<8x8xbf16>
    %cst_76 = arith.constant dense<0.000000e+00> : vector<8x8xf32>
    %87 = tpu.matmul %82, %84, %cst_76 {dimension_numbers = #tpu.dot_dimension_numbers<[1], [1], [0], [0], [0, 0, 1, 0], [], []>} : vector<8x8xbf16>, vector<8x8xbf16>, vector<8x8xf32> -> vector<8x8xf32>
    %c2 = arith.constant 2 : index
    %c0_77 = arith.constant 0 : index
    %c0_78 = arith.constant 0 : index
    %88 = vector.load %arg7[%c2, %c0_77, %c0_78] : memref<4x8x1xf32, #tpu.memory_space<vmem>>, vector<1x8x1xf32>
    %89 = vector.shape_cast %88 : vector<1x8x1xf32> to vector<8x1xf32>
    %cst_79 = arith.constant dense<0xFF800000> : vector<8xf32>
    %90 = vector.multi_reduction <maximumf>, %87, %cst_79 [1] : vector<8x8xf32> to vector<8xf32>
    %91 = vector.shape_cast %90 : vector<8xf32> to vector<8x1xf32>
    %92 = arith.maximumf %89, %91 : vector<8x1xf32>
    %93 = arith.subf %89, %92 : vector<8x1xf32>
    %94 = math.exp %93 : vector<8x1xf32>
    %95 = vector.broadcast %92 : vector<8x1xf32> to vector<8x8xf32>
    %96 = arith.subf %87, %95 : vector<8x8xf32>
    %97 = math.exp %96 : vector<8x8xf32>
    %c2_80 = arith.constant 2 : index
    %c0_81 = arith.constant 0 : index
    %c0_82 = arith.constant 0 : index
    %98 = vector.load %arg8[%c2_80, %c0_81, %c0_82] : memref<4x8x1xf32, #tpu.memory_space<vmem>>, vector<1x8x1xf32>
    %99 = vector.shape_cast %98 : vector<1x8x1xf32> to vector<8x1xf32>
    %100 = arith.mulf %94, %99 : vector<8x1xf32>
    %cst_83 = arith.constant dense<0.000000e+00> : vector<8xf32>
    %101 = vector.multi_reduction <add>, %97, %cst_83 [1] : vector<8x8xf32> to vector<8xf32>
    %102 = vector.shape_cast %101 : vector<8xf32> to vector<8x1xf32>
    %103 = arith.addf %100, %102 : vector<8x1xf32>
    %c2_84 = arith.constant 2 : index
    %c0_85 = arith.constant 0 : index
    %c0_86 = arith.constant 0 : index
    %104 = vector.load %arg8[%c2_84, %c0_85, %c0_86] : memref<4x8x1xf32, #tpu.memory_space<vmem>>, vector<1x8x1xf32>
    %105 = vector.shape_cast %104 : vector<1x8x1xf32> to vector<8x1xf32>
    %106 = vector.shape_cast %103 : vector<8x1xf32> to vector<1x8x1xf32>
    tpu.vector_store %arg8[%c2_84, %c0_85, %c0_86], %106 {strides = array<i32>} : memref<4x8x1xf32, #tpu.memory_space<vmem>>, vector<1x8x1xf32>,
    %c2_87 = arith.constant 2 : index
    %c0_88 = arith.constant 0 : index
    %c0_89 = arith.constant 0 : index
    %107 = vector.load %arg9[%c2_87, %c0_88, %c0_89] : memref<4x8x8xf32, #tpu.memory_space<vmem>>, vector<1x8x8xf32>
    %108 = vector.shape_cast %107 : vector<1x8x8xf32> to vector<8x8xf32>
    %109 = vector.broadcast %94 : vector<8x1xf32> to vector<8x8xf32>
    %110 = arith.mulf %109, %108 : vector<8x8xf32>
    %111 = arith.truncf %97 : vector<8x8xf32> to vector<8x8xbf16>
    %cst_90 = arith.constant dense<0.000000e+00> : vector<8x8xf32>
    %112 = tpu.matmul %111, %86, %cst_90 {dimension_numbers = #tpu.dot_dimension_numbers<[1], [0], [0], [1], [0, 0, 1, 1], [], []>} : vector<8x8xbf16>, vector<8x8xbf16>, vector<8x8xf32> -> vector<8x8xf32>
    %113 = arith.addf %110, %112 : vector<8x8xf32>
    %c2_91 = arith.constant 2 : index
    %c0_92 = arith.constant 0 : index
    %c0_93 = arith.constant 0 : index
    %114 = vector.load %arg9[%c2_91, %c0_92, %c0_93] : memref<4x8x8xf32, #tpu.memory_space<vmem>>, vector<1x8x8xf32>
    %115 = vector.shape_cast %114 : vector<1x8x8xf32> to vector<8x8xf32>
    %116 = vector.shape_cast %113 : vector<8x8xf32> to vector<1x8x8xf32>
    tpu.vector_store %arg9[%c2_91, %c0_92, %c0_93], %116 {strides = array<i32>} : memref<4x8x8xf32, #tpu.memory_space<vmem>>, vector<1x8x8xf32>,
    %c2_94 = arith.constant 2 : index
    %c0_95 = arith.constant 0 : index
    %c0_96 = arith.constant 0 : index
    %117 = vector.load %arg7[%c2_94, %c0_95, %c0_96] : memref<4x8x1xf32, #tpu.memory_space<vmem>>, vector<1x8x1xf32>
    %118 = vector.shape_cast %117 : vector<1x8x1xf32> to vector<8x1xf32>
    %119 = vector.shape_cast %92 : vector<8x1xf32> to vector<1x8x1xf32>
    tpu.vector_store %arg7[%c2_94, %c0_95, %c0_96], %119 {strides = array<i32>} : memref<4x8x1xf32, #tpu.memory_space<vmem>>, vector<1x8x1xf32>,
    %c0_97 = arith.constant 0 : index
    %c0_98 = arith.constant 0 : index
    %c0_99 = arith.constant 0 : index
    %c24 = arith.constant 24 : index
    %120 = vector.load %arg3[%c0_97, %c0_98, %c0_99, %c24] : memref<1x1x8x32xbf16, #tpu.memory_space<vmem>>, vector<1x1x8x8xbf16>
    %121 = vector.shape_cast %120 : vector<1x1x8x8xbf16> to vector<8x8xbf16>
    %c0_100 = arith.constant 0 : index
    %c0_101 = arith.constant 0 : index
    %c0_102 = arith.constant 0 : index
    %c24_103 = arith.constant 24 : index
    %122 = vector.load %arg4[%c0_100, %c0_101, %c0_102, %c24_103] : memref<1x1x8x32xbf16, #tpu.memory_space<vmem>>, vector<1x1x8x8xbf16>
    %123 = vector.shape_cast %122 : vector<1x1x8x8xbf16> to vector<8x8xbf16>
    %c0_104 = arith.constant 0 : index
    %c0_105 = arith.constant 0 : index
    %c0_106 = arith.constant 0 : index
    %c24_107 = arith.constant 24 : index
    %124 = vector.load %arg5[%c0_104, %c0_105, %c0_106, %c24_107] : memref<1x1x8x32xbf16, #tpu.memory_space<vmem>>, vector<1x1x8x8xbf16>
    %125 = vector.shape_cast %124 : vector<1x1x8x8xbf16> to vector<8x8xbf16>
    %cst_108 = arith.constant dense<0.000000e+00> : vector<8x8xf32>
    %126 = tpu.matmul %121, %123, %cst_108 {dimension_numbers = #tpu.dot_dimension_numbers<[1], [1], [0], [0], [0, 0, 1, 0], [], []>} : vector<8x8xbf16>, vector<8x8xbf16>, vector<8x8xf32> -> vector<8x8xf32>
    %c3 = arith.constant 3 : index
    %c0_109 = arith.constant 0 : index
    %c0_110 = arith.constant 0 : index
    %127 = vector.load %arg7[%c3, %c0_109, %c0_110] : memref<4x8x1xf32, #tpu.memory_space<vmem>>, vector<1x8x1xf32>
    %128 = vector.shape_cast %127 : vector<1x8x1xf32> to vector<8x1xf32>
    %cst_111 = arith.constant dense<0xFF800000> : vector<8xf32>
    %129 = vector.multi_reduction <maximumf>, %126, %cst_111 [1] : vector<8x8xf32> to vector<8xf32>
    %130 = vector.shape_cast %129 : vector<8xf32> to vector<8x1xf32>
    %131 = arith.maximumf %128, %130 : vector<8x1xf32>
    %132 = arith.subf %128, %131 : vector<8x1xf32>
    %133 = math.exp %132 : vector<8x1xf32>
    %134 = vector.broadcast %131 : vector<8x1xf32> to vector<8x8xf32>
    %135 = arith.subf %126, %134 : vector<8x8xf32>
    %136 = math.exp %135 : vector<8x8xf32>
    %c3_112 = arith.constant 3 : index
    %c0_113 = arith.constant 0 : index
    %c0_114 = arith.constant 0 : index
    %137 = vector.load %arg8[%c3_112, %c0_113, %c0_114] : memref<4x8x1xf32, #tpu.memory_space<vmem>>, vector<1x8x1xf32>
    %138 = vector.shape_cast %137 : vector<1x8x1xf32> to vector<8x1xf32>
    %139 = arith.mulf %133, %138 : vector<8x1xf32>
    %cst_115 = arith.constant dense<0.000000e+00> : vector<8xf32>
    %140 = vector.multi_reduction <add>, %136, %cst_115 [1] : vector<8x8xf32> to vector<8xf32>
    %141 = vector.shape_cast %140 : vector<8xf32> to vector<8x1xf32>
    %142 = arith.addf %139, %141 : vector<8x1xf32>
    %c3_116 = arith.constant 3 : index
    %c0_117 = arith.constant 0 : index
    %c0_118 = arith.constant 0 : index
    %143 = vector.load %arg8[%c3_116, %c0_117, %c0_118] : memref<4x8x1xf32, #tpu.memory_space<vmem>>, vector<1x8x1xf32>
    %144 = vector.shape_cast %143 : vector<1x8x1xf32> to vector<8x1xf32>
    %145 = vector.shape_cast %142 : vector<8x1xf32> to vector<1x8x1xf32>
    tpu.vector_store %arg8[%c3_116, %c0_117, %c0_118], %145 {strides = array<i32>} : memref<4x8x1xf32, #tpu.memory_space<vmem>>, vector<1x8x1xf32>,
    %c3_119 = arith.constant 3 : index
    %c0_120 = arith.constant 0 : index
    %c0_121 = arith.constant 0 : index
    %146 = vector.load %arg9[%c3_119, %c0_120, %c0_121] : memref<4x8x8xf32, #tpu.memory_space<vmem>>, vector<1x8x8xf32>
    %147 = vector.shape_cast %146 : vector<1x8x8xf32> to vector<8x8xf32>
    %148 = vector.broadcast %133 : vector<8x1xf32> to vector<8x8xf32>
    %149 = arith.mulf %148, %147 : vector<8x8xf32>
    %150 = arith.truncf %136 : vector<8x8xf32> to vector<8x8xbf16>
    %cst_122 = arith.constant dense<0.000000e+00> : vector<8x8xf32>
    %151 = tpu.matmul %150, %125, %cst_122 {dimension_numbers = #tpu.dot_dimension_numbers<[1], [0], [0], [1], [0, 0, 1, 1], [], []>} : vector<8x8xbf16>, vector<8x8xbf16>, vector<8x8xf32> -> vector<8x8xf32>
    %152 = arith.addf %149, %151 : vector<8x8xf32>
    %c3_123 = arith.constant 3 : index
    %c0_124 = arith.constant 0 : index
    %c0_125 = arith.constant 0 : index
    %153 = vector.load %arg9[%c3_123, %c0_124, %c0_125] : memref<4x8x8xf32, #tpu.memory_space<vmem>>, vector<1x8x8xf32>
    %154 = vector.shape_cast %153 : vector<1x8x8xf32> to vector<8x8xf32>
    %155 = vector.shape_cast %152 : vector<8x8xf32> to vector<1x8x8xf32>
    tpu.vector_store %arg9[%c3_123, %c0_124, %c0_125], %155 {strides = array<i32>} : memref<4x8x8xf32, #tpu.memory_space<vmem>>, vector<1x8x8xf32>,
    %c3_126 = arith.constant 3 : index
    %c0_127 = arith.constant 0 : index
    %c0_128 = arith.constant 0 : index
    %156 = vector.load %arg7[%c3_126, %c0_127, %c0_128] : memref<4x8x1xf32, #tpu.memory_space<vmem>>, vector<1x8x1xf32>
    %157 = vector.shape_cast %156 : vector<1x8x1xf32> to vector<8x1xf32>
    %158 = vector.shape_cast %131 : vector<8x1xf32> to vector<1x8x1xf32>
    tpu.vector_store %arg7[%c3_126, %c0_127, %c0_128], %158 {strides = array<i32>} : memref<4x8x1xf32, #tpu.memory_space<vmem>>, vector<1x8x1xf32>,
    %c0_i32_129 = arith.constant 0 : i32
    %159 = arith.cmpi eq, %arg2, %c0_i32_129 : i32
    %160 = arith.extui %159 : i1 to i32
    %c0_i32_130 = arith.constant 0 : i32
    %161 = arith.cmpi ne, %160, %c0_i32_130 : i32
    scf.if %161 {
      %c0_131 = arith.constant 0 : index
      %c0_132 = arith.constant 0 : index
      %c0_133 = arith.constant 0 : index
      %162 = vector.load %arg9[%c0_131, %c0_132, %c0_133] : memref<4x8x8xf32, #tpu.memory_space<vmem>>, vector<1x8x8xf32>
      %163 = vector.shape_cast %162 : vector<1x8x8xf32> to vector<8x8xf32>
      %c0_134 = arith.constant 0 : index
      %c0_135 = arith.constant 0 : index
      %c0_136 = arith.constant 0 : index
      %164 = vector.load %arg8[%c0_134, %c0_135, %c0_136] : memref<4x8x1xf32, #tpu.memory_space<vmem>>, vector<1x8x1xf32>
      %165 = vector.shape_cast %164 : vector<1x8x1xf32> to vector<8x1xf32>
      %166 = tpu.reciprocal %165 {approx = true} : vector<8x1xf32> -> vector<8x1xf32>
      %167 = vector.broadcast %166 : vector<8x1xf32> to vector<8x8xf32>
      %168 = arith.mulf %163, %167 : vector<8x8xf32>
      %c1_137 = arith.constant 1 : index
      %c0_138 = arith.constant 0 : index
      %c0_139 = arith.constant 0 : index
      %169 = vector.load %arg9[%c1_137, %c0_138, %c0_139] : memref<4x8x8xf32, #tpu.memory_space<vmem>>, vector<1x8x8xf32>
      %170 = vector.shape_cast %169 : vector<1x8x8xf32> to vector<8x8xf32>
      %c1_140 = arith.constant 1 : index
      %c0_141 = arith.constant 0 : index
      %c0_142 = arith.constant 0 : index
      %171 = vector.load %arg8[%c1_140, %c0_141, %c0_142] : memref<4x8x1xf32, #tpu.memory_space<vmem>>, vector<1x8x1xf32>
      %172 = vector.shape_cast %171 : vector<1x8x1xf32> to vector<8x1xf32>
      %173 = tpu.reciprocal %172 {approx = true} : vector<8x1xf32> -> vector<8x1xf32>
      %174 = vector.broadcast %173 : vector<8x1xf32> to vector<8x8xf32>
      %175 = arith.mulf %170, %174 : vector<8x8xf32>
      %c2_143 = arith.constant 2 : index
      %c0_144 = arith.constant 0 : index
      %c0_145 = arith.constant 0 : index
      %176 = vector.load %arg9[%c2_143, %c0_144, %c0_145] : memref<4x8x8xf32, #tpu.memory_space<vmem>>, vector<1x8x8xf32>
      %177 = vector.shape_cast %176 : vector<1x8x8xf32> to vector<8x8xf32>
      %c2_146 = arith.constant 2 : index
      %c0_147 = arith.constant 0 : index
      %c0_148 = arith.constant 0 : index
      %178 = vector.load %arg8[%c2_146, %c0_147, %c0_148] : memref<4x8x1xf32, #tpu.memory_space<vmem>>, vector<1x8x1xf32>
      %179 = vector.shape_cast %178 : vector<1x8x1xf32> to vector<8x1xf32>
      %180 = tpu.reciprocal %179 {approx = true} : vector<8x1xf32> -> vector<8x1xf32>
      %181 = vector.broadcast %180 : vector<8x1xf32> to vector<8x8xf32>
      %182 = arith.mulf %177, %181 : vector<8x8xf32>
      %c3_149 = arith.constant 3 : index
      %c0_150 = arith.constant 0 : index
      %c0_151 = arith.constant 0 : index
      %183 = vector.load %arg9[%c3_149, %c0_150, %c0_151] : memref<4x8x8xf32, #tpu.memory_space<vmem>>, vector<1x8x8xf32>
      %184 = vector.shape_cast %183 : vector<1x8x8xf32> to vector<8x8xf32>
      %c3_152 = arith.constant 3 : index
      %c0_153 = arith.constant 0 : index
      %c0_154 = arith.constant 0 : index
      %185 = vector.load %arg8[%c3_152, %c0_153, %c0_154] : memref<4x8x1xf32, #tpu.memory_space<vmem>>, vector<1x8x1xf32>
      %186 = vector.shape_cast %185 : vector<1x8x1xf32> to vector<8x1xf32>
      %187 = tpu.reciprocal %186 {approx = true} : vector<8x1xf32> -> vector<8x1xf32>
      %188 = vector.broadcast %187 : vector<8x1xf32> to vector<8x8xf32>
      %189 = arith.mulf %184, %188 : vector<8x8xf32>
      %190 = tpu.concatenate %168, %175, %182, %189 in 1 : vector<8x8xf32>, vector<8x8xf32>, vector<8x8xf32>, vector<8x8xf32> -> vector<8x32xf32>
      %191 = arith.truncf %190 : vector<8x32xf32> to vector<8x32xbf16>
      %c0_155 = arith.constant 0 : index
      %c0_156 = arith.constant 0 : index
      %c0_157 = arith.constant 0 : index
      %192 = vector.load %arg6[%c0_155, %c0_156, %c0_157] : memref<1x8x32xbf16, #tpu.memory_space<vmem>>, vector<1x8x32xbf16>
      %193 = vector.shape_cast %192 : vector<1x8x32xbf16> to vector<8x32xbf16>
      %194 = vector.shape_cast %191 : vector<8x32xbf16> to vector<1x8x32xbf16>
      tpu.vector_store %arg6[%c0_155, %c0_156, %c0_157], %194 {strides = array<i32>} : memref<1x8x32xbf16, #tpu.memory_space<vmem>>, vector<1x8x32xbf16>,
    } else {
    }
    return
  }
  func.func @transform_0(%arg0: i32, %arg1: i32, %arg2: i32) -> (i32, i32, i32, i32) {
    %c0_i32 = arith.constant 0 : i32
    %c0_i32_0 = arith.constant 0 : i32
    %c0_i32_1 = arith.constant 0 : i32
    return %c0_i32, %arg0, %arg1, %c0_i32_0 : i32, i32, i32, i32
  }
  func.func @transform_1(%arg0: i32, %arg1: i32, %arg2: i32) -> (i32, i32, i32, i32) {
    %c1_i32 = arith.constant 1 : i32
    %c0_i32 = arith.constant 0 : i32
    %c0_i32_0 = arith.constant 0 : i32
    return %c1_i32, %arg0, %arg2, %c0_i32 : i32, i32, i32, i32
  }
  func.func @transform_2(%arg0: i32, %arg1: i32, %arg2: i32) -> (i32, i32, i32, i32) {
    %c2_i32 = arith.constant 2 : i32
    %c0_i32 = arith.constant 0 : i32
    %c0_i32_0 = arith.constant 0 : i32
    return %c2_i32, %arg0, %arg2, %c0_i32 : i32, i32, i32, i32
  }
  func.func @transform_3(%arg0: i32, %arg1: i32, %arg2: i32) -> (i32, i32, i32) {
    %c0_i32 = arith.constant 0 : i32
    %c0_i32_0 = arith.constant 0 : i32
    return %arg0, %arg1, %c0_i32 : i32, i32, i32
  }
}

module attributes {stable_mosaic.version = 11 : i64} {
  func.func @_fused_linear_kernel(%arg0: i32, %arg1: memref<16x32xbf16, #tpu.memory_space<vmem>>, %arg2: memref<1x32x32xbf16, #tpu.memory_space<vmem>>, %arg3: memref<1x1x32xf32, #tpu.memory_space<vmem>>, %arg4: memref<1x16x32xf32, #tpu.memory_space<vmem>>, %arg5: memref<1x16x32xf32, #tpu.memory_space<vmem>>) attributes {dimension_semantics = [#tpu.dimension_semantics<parallel>], iteration_bounds = array<i64: 1>, scalar_prefetch = 0 : i64, scratch_operands = 0 : i64, tpu.core_type = #tpu.core_type<tc>, window_params = [{transform_indices = @transform_0, window_bounds = array<i64: 16, 32>}, {pipeline_mode = #tpu.pipeline_mode<synchronous>, transform_indices = @transform_1, window_bounds = array<i64: 1, 32, 32>}, {pipeline_mode = #tpu.pipeline_mode<synchronous>, transform_indices = @transform_2, window_bounds = array<i64: 1, 1, 32>}, {transform_indices = @transform_3, window_bounds = array<i64: 1, 16, 32>}, {transform_indices = @transform_4, window_bounds = array<i64: 1, 16, 32>}]} {
    %c0 = arith.constant 0 : index
    %c0_0 = arith.constant 0 : index
    %0 = vector.load %arg1[%c0, %c0_0] : memref<16x32xbf16, #tpu.memory_space<vmem>>, vector<16x32xbf16>
    %c0_1 = arith.constant 0 : index
    %c0_2 = arith.constant 0 : index
    %c0_3 = arith.constant 0 : index
    %1 = vector.load %arg2[%c0_1, %c0_2, %c0_3] : memref<1x32x32xbf16, #tpu.memory_space<vmem>>, vector<1x32x32xbf16>
    %2 = vector.shape_cast %1 : vector<1x32x32xbf16> to vector<32x32xbf16>
    %cst = arith.constant dense<0.000000e+00> : vector<16x32xf32>
    %3 = tpu.matmul %0, %2, %cst {dimension_numbers = #tpu.dot_dimension_numbers<[1], [0], [0], [1], [0, 0, 1, 1], [], []>} : vector<16x32xbf16>, vector<32x32xbf16>, vector<16x32xf32> -> vector<16x32xf32>
    %c0_4 = arith.constant 0 : index
    %c0_5 = arith.constant 0 : index
    %c0_6 = arith.constant 0 : index
    %4 = vector.load %arg3[%c0_4, %c0_5, %c0_6] : memref<1x1x32xf32, #tpu.memory_space<vmem>>, vector<1x1x32xf32>
    %5 = vector.shape_cast %4 : vector<1x1x32xf32> to vector<1x32xf32>
    %6 = vector.broadcast %5 : vector<1x32xf32> to vector<16x32xf32>
    %7 = arith.addf %3, %6 : vector<16x32xf32>
    %c0_7 = arith.constant 0 : index
    %c0_8 = arith.constant 0 : index
    %c0_9 = arith.constant 0 : index
    %8 = vector.load %arg4[%c0_7, %c0_8, %c0_9] : memref<1x16x32xf32, #tpu.memory_space<vmem>>, vector<1x16x32xf32>
    %9 = vector.shape_cast %8 : vector<1x16x32xf32> to vector<16x32xf32>
    %10 = arith.addf %7, %9 : vector<16x32xf32>
    %c0_10 = arith.constant 0 : index
    %c0_11 = arith.constant 0 : index
    %c0_12 = arith.constant 0 : index
    %11 = vector.load %arg5[%c0_10, %c0_11, %c0_12] : memref<1x16x32xf32, #tpu.memory_space<vmem>>, vector<1x16x32xf32>
    %12 = vector.shape_cast %11 : vector<1x16x32xf32> to vector<16x32xf32>
    %13 = vector.shape_cast %10 : vector<16x32xf32> to vector<1x16x32xf32>
    tpu.vector_store %arg5[%c0_10, %c0_11, %c0_12], %13 {strides = array<i32>} : memref<1x16x32xf32, #tpu.memory_space<vmem>>, vector<1x16x32xf32>,
    return
  }
  func.func @transform_0(%arg0: i32) -> (i32, i32) {
    %c0_i32 = arith.constant 0 : i32
    %c0_i32_0 = arith.constant 0 : i32
    return %arg0, %c0_i32 : i32, i32
  }
  func.func @transform_1(%arg0: i32) -> (i32, i32, i32) {
    %c0_i32 = arith.constant 0 : i32
    %c0_i32_0 = arith.constant 0 : i32
    %c0_i32_1 = arith.constant 0 : i32
    %c0_i32_2 = arith.constant 0 : i32
    return %c0_i32, %c0_i32_0, %c0_i32_1 : i32, i32, i32
  }
  func.func @transform_2(%arg0: i32) -> (i32, i32, i32) {
    %c0_i32 = arith.constant 0 : i32
    %c0_i32_0 = arith.constant 0 : i32
    %c0_i32_1 = arith.constant 0 : i32
    %c0_i32_2 = arith.constant 0 : i32
    return %c0_i32, %c0_i32_0, %c0_i32_1 : i32, i32, i32
  }
  func.func @transform_3(%arg0: i32) -> (i32, i32, i32) {
    %c0_i32 = arith.constant 0 : i32
    %c0_i32_0 = arith.constant 0 : i32
    %c0_i32_1 = arith.constant 0 : i32
    return %c0_i32, %arg0, %c0_i32_0 : i32, i32, i32
  }
  func.func @transform_4(%arg0: i32) -> (i32, i32, i32) {
    %c0_i32 = arith.constant 0 : i32
    %c0_i32_0 = arith.constant 0 : i32
    %c0_i32_1 = arith.constant 0 : i32
    return %c0_i32, %arg0, %c0_i32_0 : i32, i32, i32
  }
}

module attributes {stable_mosaic.version = 11 : i64} {
  func.func @_fused_linear_kernel(%arg0: i32, %arg1: memref<16x32xf32, #tpu.memory_space<vmem>>, %arg2: memref<1x32xf32, #tpu.memory_space<vmem>>, %arg3: memref<1x32xf32, #tpu.memory_space<vmem>>, %arg4: memref<1x32x128xbf16, #tpu.memory_space<vmem>>, %arg5: memref<1x1x128xf32, #tpu.memory_space<vmem>>, %arg6: memref<1x16x128xbf16, #tpu.memory_space<vmem>>) attributes {dimension_semantics = [#tpu.dimension_semantics<parallel>], iteration_bounds = array<i64: 1>, scalar_prefetch = 0 : i64, scratch_operands = 0 : i64, tpu.core_type = #tpu.core_type<tc>, window_params = [{transform_indices = @transform_0, window_bounds = array<i64: 16, 32>}, {pipeline_mode = #tpu.pipeline_mode<synchronous>, transform_indices = @transform_1, window_bounds = array<i64: 1, 32>}, {pipeline_mode = #tpu.pipeline_mode<synchronous>, transform_indices = @transform_2, window_bounds = array<i64: 1, 32>}, {pipeline_mode = #tpu.pipeline_mode<synchronous>, transform_indices = @transform_3, window_bounds = array<i64: 1, 32, 128>}, {pipeline_mode = #tpu.pipeline_mode<synchronous>, transform_indices = @transform_4, window_bounds = array<i64: 1, 1, 128>}, {transform_indices = @transform_5, window_bounds = array<i64: 1, 16, 128>}]} {
    %c0 = arith.constant 0 : index
    %c0_0 = arith.constant 0 : index
    %0 = vector.load %arg1[%c0, %c0_0] : memref<16x32xf32, #tpu.memory_space<vmem>>, vector<16x32xf32>
    %cst = arith.constant dense<0.000000e+00> : vector<16xf32>
    %1 = vector.multi_reduction <add>, %0, %cst [1] : vector<16x32xf32> to vector<16xf32>
    %2 = vector.shape_cast %1 : vector<16xf32> to vector<16x1xf32>
    %cst_1 = arith.constant 3.200000e+01 : f32
    %3 = vector.broadcast %cst_1 : f32 to vector<16x1xf32>
    %4 = arith.divf %2, %3 : vector<16x1xf32>
    %5 = vector.broadcast %4 : vector<16x1xf32> to vector<16x32xf32>
    %6 = arith.subf %0, %5 : vector<16x32xf32>
    %7 = arith.mulf %6, %6 : vector<16x32xf32>
    %cst_2 = arith.constant dense<0.000000e+00> : vector<16xf32>
    %8 = vector.multi_reduction <add>, %7, %cst_2 [1] : vector<16x32xf32> to vector<16xf32>
    %9 = vector.shape_cast %8 : vector<16xf32> to vector<16x1xf32>
    %cst_3 = arith.constant 3.200000e+01 : f32
    %10 = vector.broadcast %cst_3 : f32 to vector<16x1xf32>
    %11 = arith.divf %9, %10 : vector<16x1xf32>
    %12 = vector.broadcast %4 : vector<16x1xf32> to vector<16x32xf32>
    %13 = arith.subf %0, %12 : vector<16x32xf32>
    %cst_4 = arith.constant 9.99999974E-6 : f32
    %14 = vector.broadcast %cst_4 : f32 to vector<16x1xf32>
    %15 = arith.addf %11, %14 : vector<16x1xf32>
    %16 = math.rsqrt %15 : vector<16x1xf32>
    %17 = vector.broadcast %16 : vector<16x1xf32> to vector<16x32xf32>
    %18 = arith.mulf %13, %17 : vector<16x32xf32>
    %c0_5 = arith.constant 0 : index
    %c0_6 = arith.constant 0 : index
    %19 = vector.load %arg2[%c0_5, %c0_6] : memref<1x32xf32, #tpu.memory_space<vmem>>, vector<1x32xf32>
    %20 = vector.broadcast %19 : vector<1x32xf32> to vector<16x32xf32>
    %21 = arith.mulf %18, %20 : vector<16x32xf32>
    %c0_7 = arith.constant 0 : index
    %c0_8 = arith.constant 0 : index
    %22 = vector.load %arg3[%c0_7, %c0_8] : memref<1x32xf32, #tpu.memory_space<vmem>>, vector<1x32xf32>
    %23 = vector.broadcast %22 : vector<1x32xf32> to vector<16x32xf32>
    %24 = arith.addf %21, %23 : vector<16x32xf32>
    %25 = arith.truncf %24 : vector<16x32xf32> to vector<16x32xbf16>
    %c0_9 = arith.constant 0 : index
    %c0_10 = arith.constant 0 : index
    %c0_11 = arith.constant 0 : index
    %26 = vector.load %arg4[%c0_9, %c0_10, %c0_11] : memref<1x32x128xbf16, #tpu.memory_space<vmem>>, vector<1x32x128xbf16>
    %27 = vector.shape_cast %26 : vector<1x32x128xbf16> to vector<32x128xbf16>
    %cst_12 = arith.constant dense<0.000000e+00> : vector<16x128xf32>
    %28 = tpu.matmul %25, %27, %cst_12 {dimension_numbers = #tpu.dot_dimension_numbers<[1], [0], [0], [1], [0, 0, 1, 1], [], []>} : vector<16x32xbf16>, vector<32x128xbf16>, vector<16x128xf32> -> vector<16x128xf32>
    %c0_13 = arith.constant 0 : index
    %c0_14 = arith.constant 0 : index
    %c0_15 = arith.constant 0 : index
    %29 = vector.load %arg5[%c0_13, %c0_14, %c0_15] : memref<1x1x128xf32, #tpu.memory_space<vmem>>, vector<1x1x128xf32>
    %30 = vector.shape_cast %29 : vector<1x1x128xf32> to vector<1x128xf32>
    %31 = vector.broadcast %30 : vector<1x128xf32> to vector<16x128xf32>
    %32 = arith.addf %28, %31 : vector<16x128xf32>
    %33 = arith.mulf %32, %32 : vector<16x128xf32>
    %34 = arith.mulf %32, %33 : vector<16x128xf32>
    %cst_16 = arith.constant 4.471500e-02 : f32
    %35 = vector.broadcast %cst_16 : f32 to vector<16x128xf32>
    %36 = arith.mulf %35, %34 : vector<16x128xf32>
    %37 = arith.addf %32, %36 : vector<16x128xf32>
    %cst_17 = arith.constant 0.797884583 : f32
    %38 = vector.broadcast %cst_17 : f32 to vector<16x128xf32>
    %39 = arith.mulf %38, %37 : vector<16x128xf32>
    %40 = math.tanh %39 : vector<16x128xf32>
    %cst_18 = arith.constant 1.000000e+00 : f32
    %41 = vector.broadcast %cst_18 : f32 to vector<16x128xf32>
    %42 = arith.addf %41, %40 : vector<16x128xf32>
    %cst_19 = arith.constant 5.000000e-01 : f32
    %43 = vector.broadcast %cst_19 : f32 to vector<16x128xf32>
    %44 = arith.mulf %43, %42 : vector<16x128xf32>
    %45 = arith.mulf %32, %44 : vector<16x128xf32>
    %46 = arith.truncf %45 : vector<16x128xf32> to vector<16x128xbf16>
    %c0_20 = arith.constant 0 : index
    %c0_21 = arith.constant 0 : index
    %c0_22 = arith.constant 0 : index
    %47 = vector.load %arg6[%c0_20, %c0_21, %c0_22] : memref<1x16x128xbf16, #tpu.memory_space<vmem>>, vector<1x16x128xbf16>
    %48 = vector.shape_cast %47 : vector<1x16x128xbf16> to vector<16x128xbf16>
    %49 = vector.shape_cast %46 : vector<16x128xbf16> to vector<1x16x128xbf16>
    tpu.vector_store %arg6[%c0_20, %c0_21, %c0_22], %49 {strides = array<i32>} : memref<1x16x128xbf16, #tpu.memory_space<vmem>>, vector<1x16x128xbf16>,
    return
  }
  func.func @transform_0(%arg0: i32) -> (i32, i32) {
    %c0_i32 = arith.constant 0 : i32
    %c0_i32_0 = arith.constant 0 : i32
    return %arg0, %c0_i32 : i32, i32
  }
  func.func @transform_1(%arg0: i32) -> (i32, i32) {
    %c0_i32 = arith.constant 0 : i32
    %c0_i32_0 = arith.constant 0 : i32
    %c0_i32_1 = arith.constant 0 : i32
    return %c0_i32, %c0_i32_0 : i32, i32
  }
  func.func @transform_2(%arg0: i32) -> (i32, i32) {
    %c0_i32 = arith.constant 0 : i32
    %c0_i32_0 = arith.constant 0 : i32
    %c0_i32_1 = arith.constant 0 : i32
    return %c0_i32, %c0_i32_0 : i32, i32
  }
  func.func @transform_3(%arg0: i32) -> (i32, i32, i32) {
    %c0_i32 = arith.constant 0 : i32
    %c0_i32_0 = arith.constant 0 : i32
    %c0_i32_1 = arith.constant 0 : i32
    %c0_i32_2 = arith.constant 0 : i32
    return %c0_i32, %c0_i32_0, %c0_i32_1 : i32, i32, i32
  }
  func.func @transform_4(%arg0: i32) -> (i32, i32, i32) {
    %c0_i32 = arith.constant 0 : i32
    %c0_i32_0 = arith.constant 0 : i32
    %c0_i32_1 = arith.constant 0 : i32
    %c0_i32_2 = arith.constant 0 : i32
    return %c0_i32, %c0_i32_0, %c0_i32_1 : i32, i32, i32
  }
  func.func @transform_5(%arg0: i32) -> (i32, i32, i32) {
    %c0_i32 = arith.constant 0 : i32
    %c0_i32_0 = arith.constant 0 : i32
    %c0_i32_1 = arith.constant 0 : i32
    return %c0_i32, %arg0, %c0_i32_0 : i32, i32, i32
  }
}

module attributes {stable_mosaic.version = 11 : i64} {
  func.func @_fused_linear_kernel(%arg0: i32, %arg1: memref<16x128xbf16, #tpu.memory_space<vmem>>, %arg2: memref<1x128x32xbf16, #tpu.memory_space<vmem>>, %arg3: memref<1x1x32xf32, #tpu.memory_space<vmem>>, %arg4: memref<1x16x32xf32, #tpu.memory_space<vmem>>, %arg5: memref<1x16x32xf32, #tpu.memory_space<vmem>>) attributes {dimension_semantics = [#tpu.dimension_semantics<parallel>], iteration_bounds = array<i64: 1>, scalar_prefetch = 0 : i64, scratch_operands = 0 : i64, tpu.core_type = #tpu.core_type<tc>, window_params = [{transform_indices = @transform_0, window_bounds = array<i64: 16, 128>}, {pipeline_mode = #tpu.pipeline_mode<synchronous>, transform_indices = @transform_1, window_bounds = array<i64: 1, 128, 32>}, {pipeline_mode = #tpu.pipeline_mode<synchronous>, transform_indices = @transform_2, window_bounds = array<i64: 1, 1, 32>}, {transform_indices = @transform_3, window_bounds = array<i64: 1, 16, 32>}, {transform_indices = @transform_4, window_bounds = array<i64: 1, 16, 32>}]} {
    %c0 = arith.constant 0 : index
    %c0_0 = arith.constant 0 : index
    %0 = vector.load %arg1[%c0, %c0_0] : memref<16x128xbf16, #tpu.memory_space<vmem>>, vector<16x128xbf16>
    %c0_1 = arith.constant 0 : index
    %c0_2 = arith.constant 0 : index
    %c0_3 = arith.constant 0 : index
    %1 = vector.load %arg2[%c0_1, %c0_2, %c0_3] : memref<1x128x32xbf16, #tpu.memory_space<vmem>>, vector<1x128x32xbf16>
    %2 = vector.shape_cast %1 : vector<1x128x32xbf16> to vector<128x32xbf16>
    %cst = arith.constant dense<0.000000e+00> : vector<16x32xf32>
    %3 = tpu.matmul %0, %2, %cst {dimension_numbers = #tpu.dot_dimension_numbers<[1], [0], [0], [1], [0, 0, 1, 1], [], []>} : vector<16x128xbf16>, vector<128x32xbf16>, vector<16x32xf32> -> vector<16x32xf32>
    %c0_4 = arith.constant 0 : index
    %c0_5 = arith.constant 0 : index
    %c0_6 = arith.constant 0 : index
    %4 = vector.load %arg3[%c0_4, %c0_5, %c0_6] : memref<1x1x32xf32, #tpu.memory_space<vmem>>, vector<1x1x32xf32>
    %5 = vector.shape_cast %4 : vector<1x1x32xf32> to vector<1x32xf32>
    %6 = vector.broadcast %5 : vector<1x32xf32> to vector<16x32xf32>
    %7 = arith.addf %3, %6 : vector<16x32xf32>
    %c0_7 = arith.constant 0 : index
    %c0_8 = arith.constant 0 : index
    %c0_9 = arith.constant 0 : index
    %8 = vector.load %arg4[%c0_7, %c0_8, %c0_9] : memref<1x16x32xf32, #tpu.memory_space<vmem>>, vector<1x16x32xf32>
    %9 = vector.shape_cast %8 : vector<1x16x32xf32> to vector<16x32xf32>
    %10 = arith.addf %7, %9 : vector<16x32xf32>
    %c0_10 = arith.constant 0 : index
    %c0_11 = arith.constant 0 : index
    %c0_12 = arith.constant 0 : index
    %11 = vector.load %arg5[%c0_10, %c0_11, %c0_12] : memref<1x16x32xf32, #tpu.memory_space<vmem>>, vector<1x16x32xf32>
    %12 = vector.shape_cast %11 : vector<1x16x32xf32> to vector<16x32xf32>
    %13 = vector.shape_cast %10 : vector<16x32xf32> to vector<1x16x32xf32>
    tpu.vector_store %arg5[%c0_10, %c0_11, %c0_12], %13 {strides = array<i32>} : memref<1x16x32xf32, #tpu.memory_space<vmem>>, vector<1x16x32xf32>,
    return
  }
  func.func @transform_0(%arg0: i32) -> (i32, i32) {
    %c0_i32 = arith.constant 0 : i32
    %c0_i32_0 = arith.constant 0 : i32
    return %arg0, %c0_i32 : i32, i32
  }
  func.func @transform_1(%arg0: i32) -> (i32, i32, i32) {
    %c0_i32 = arith.constant 0 : i32
    %c0_i32_0 = arith.constant 0 : i32
    %c0_i32_1 = arith.constant 0 : i32
    %c0_i32_2 = arith.constant 0 : i32
    return %c0_i32, %c0_i32_0, %c0_i32_1 : i32, i32, i32
  }
  func.func @transform_2(%arg0: i32) -> (i32, i32, i32) {
    %c0_i32 = arith.constant 0 : i32
    %c0_i32_0 = arith.constant 0 : i32
    %c0_i32_1 = arith.constant 0 : i32
    %c0_i32_2 = arith.constant 0 : i32
    return %c0_i32, %c0_i32_0, %c0_i32_1 : i32, i32, i32
  }
  func.func @transform_3(%arg0: i32) -> (i32, i32, i32) {
    %c0_i32 = arith.constant 0 : i32
    %c0_i32_0 = arith.constant 0 : i32
    %c0_i32_1 = arith.constant 0 : i32
    return %c0_i32, %arg0, %c0_i32_0 : i32, i32, i32
  }
  func.func @transform_4(%arg0: i32) -> (i32, i32, i32) {
    %c0_i32 = arith.constant 0 : i32
    %c0_i32_0 = arith.constant 0 : i32
    %c0_i32_1 = arith.constant 0 : i32
    return %c0_i32, %arg0, %c0_i32_0 : i32, i32, i32
  }
}

module attributes {stable_mosaic.version = 11 : i64} {
  func.func @_ner_head_kernel(%arg0: i32, %arg1: memref<16x32xf32, #tpu.memory_space<vmem>>, %arg2: memref<32x64xbf16, #tpu.memory_space<vmem>>, %arg3: memref<1x64xf32, #tpu.memory_space<vmem>>, %arg4: memref<64x128xbf16, #tpu.memory_space<vmem>>, %arg5: memref<1x128xf32, #tpu.memory_space<vmem>>, %arg6: memref<16x128xf32, #tpu.memory_space<vmem>>) attributes {dimension_semantics = [#tpu.dimension_semantics<parallel>], iteration_bounds = array<i64: 1>, scalar_prefetch = 0 : i64, scratch_operands = 0 : i64, tpu.core_type = #tpu.core_type<tc>, window_params = [{transform_indices = @transform_0, window_bounds = array<i64: 16, 32>}, {pipeline_mode = #tpu.pipeline_mode<synchronous>, transform_indices = @transform_1, window_bounds = array<i64: 32, 64>}, {pipeline_mode = #tpu.pipeline_mode<synchronous>, transform_indices = @transform_2, window_bounds = array<i64: 1, 64>}, {pipeline_mode = #tpu.pipeline_mode<synchronous>, transform_indices = @transform_3, window_bounds = array<i64: 64, 128>}, {pipeline_mode = #tpu.pipeline_mode<synchronous>, transform_indices = @transform_4, window_bounds = array<i64: 1, 128>}, {transform_indices = @transform_5, window_bounds = array<i64: 16, 128>}]} {
    %c0 = arith.constant 0 : index
    %c0_0 = arith.constant 0 : index
    %0 = vector.load %arg1[%c0, %c0_0] : memref<16x32xf32, #tpu.memory_space<vmem>>, vector<16x32xf32>
    %1 = arith.truncf %0 : vector<16x32xf32> to vector<16x32xbf16>
    %c0_1 = arith.constant 0 : index
    %c0_2 = arith.constant 0 : index
    %2 = vector.load %arg2[%c0_1, %c0_2] : memref<32x64xbf16, #tpu.memory_space<vmem>>, vector<32x64xbf16>
    %cst = arith.constant dense<0.000000e+00> : vector<16x64xf32>
    %3 = tpu.matmul %1, %2, %cst {dimension_numbers = #tpu.dot_dimension_numbers<[1], [0], [0], [1], [0, 0, 1, 1], [], []>} : vector<16x32xbf16>, vector<32x64xbf16>, vector<16x64xf32> -> vector<16x64xf32>
    %c0_3 = arith.constant 0 : index
    %c0_4 = arith.constant 0 : index
    %4 = vector.load %arg3[%c0_3, %c0_4] : memref<1x64xf32, #tpu.memory_space<vmem>>, vector<1x64xf32>
    %5 = vector.broadcast %4 : vector<1x64xf32> to vector<16x64xf32>
    %6 = arith.addf %3, %5 : vector<16x64xf32>
    %7 = arith.mulf %6, %6 : vector<16x64xf32>
    %8 = arith.mulf %6, %7 : vector<16x64xf32>
    %cst_5 = arith.constant 4.471500e-02 : f32
    %9 = vector.broadcast %cst_5 : f32 to vector<16x64xf32>
    %10 = arith.mulf %9, %8 : vector<16x64xf32>
    %11 = arith.addf %6, %10 : vector<16x64xf32>
    %cst_6 = arith.constant 0.797884583 : f32
    %12 = vector.broadcast %cst_6 : f32 to vector<16x64xf32>
    %13 = arith.mulf %12, %11 : vector<16x64xf32>
    %14 = math.tanh %13 : vector<16x64xf32>
    %cst_7 = arith.constant 1.000000e+00 : f32
    %15 = vector.broadcast %cst_7 : f32 to vector<16x64xf32>
    %16 = arith.addf %15, %14 : vector<16x64xf32>
    %cst_8 = arith.constant 5.000000e-01 : f32
    %17 = vector.broadcast %cst_8 : f32 to vector<16x64xf32>
    %18 = arith.mulf %17, %16 : vector<16x64xf32>
    %19 = arith.mulf %6, %18 : vector<16x64xf32>
    %20 = arith.truncf %19 : vector<16x64xf32> to vector<16x64xbf16>
    %c0_9 = arith.constant 0 : index
    %c0_10 = arith.constant 0 : index
    %21 = vector.load %arg4[%c0_9, %c0_10] : memref<64x128xbf16, #tpu.memory_space<vmem>>, vector<64x128xbf16>
    %cst_11 = arith.constant dense<0.000000e+00> : vector<16x128xf32>
    %22 = tpu.matmul %20, %21, %cst_11 {dimension_numbers = #tpu.dot_dimension_numbers<[1], [0], [0], [1], [0, 0, 1, 1], [], []>} : vector<16x64xbf16>, vector<64x128xbf16>, vector<16x128xf32> -> vector<16x128xf32>
    %c0_12 = arith.constant 0 : index
    %c0_13 = arith.constant 0 : index
    %23 = vector.load %arg5[%c0_12, %c0_13] : memref<1x128xf32, #tpu.memory_space<vmem>>, vector<1x128xf32>
    %24 = vector.broadcast %23 : vector<1x128xf32> to vector<16x128xf32>
    %25 = arith.addf %22, %24 : vector<16x128xf32>
    %c0_14 = arith.constant 0 : index
    %c0_15 = arith.constant 0 : index
    %26 = vector.load %arg6[%c0_14, %c0_15] : memref<16x128xf32, #tpu.memory_space<vmem>>, vector<16x128xf32>
    tpu.vector_store %arg6[%c0_14, %c0_15], %25 {strides = array<i32>} : memref<16x128xf32, #tpu.memory_space<vmem>>, vector<16x128xf32>,
    return
  }
  func.func @transform_0(%arg0: i32) -> (i32, i32) {
    %c0_i32 = arith.constant 0 : i32
    %c0_i32_0 = arith.constant 0 : i32
    return %arg0, %c0_i32 : i32, i32
  }
  func.func @transform_1(%arg0: i32) -> (i32, i32) {
    %c0_i32 = arith.constant 0 : i32
    %c0_i32_0 = arith.constant 0 : i32
    %c0_i32_1 = arith.constant 0 : i32
    return %c0_i32, %c0_i32_0 : i32, i32
  }
  func.func @transform_2(%arg0: i32) -> (i32, i32) {
    %c0_i32 = arith.constant 0 : i32
    %c0_i32_0 = arith.constant 0 : i32
    %c0_i32_1 = arith.constant 0 : i32
    return %c0_i32, %c0_i32_0 : i32, i32
  }
  func.func @transform_3(%arg0: i32) -> (i32, i32) {
    %c0_i32 = arith.constant 0 : i32
    %c0_i32_0 = arith.constant 0 : i32
    %c0_i32_1 = arith.constant 0 : i32
    return %c0_i32, %c0_i32_0 : i32, i32
  }
  func.func @transform_4(%arg0: i32) -> (i32, i32) {
    %c0_i32 = arith.constant 0 : i32
    %c0_i32_0 = arith.constant 0 : i32
    %c0_i32_1 = arith.constant 0 : i32
    return %c0_i32, %c0_i32_0 : i32, i32
  }
  func.func @transform_5(%arg0: i32) -> (i32, i32) {
    %c0_i32 = arith.constant 0 : i32
    %c0_i32_0 = arith.constant 0 : i32
    return %arg0, %c0_i32 : i32, i32
  }
}

</mosaic_0001>

<bundles_post_ra>
// kernel: _lambda_.11
= control target key start
LH: loop header
LB: loop body
LE: loop exit
PB: predicated region body
PF: predicated region fallthrough
CT: control target
= control target key end

     0   :  { %vm23_vm0 = vcmask 261120   ;;  %v275_v4 = vmov 32.0   ;;  %vm127_vm8 = vcmask 257024   ;;  %s376_s0 = inlined_call_operand.vmem [shape: f32[16,32], index: 0, kind: input, shape index: {}]   ;;  %s377_s1 = inlined_call_operand.vmem [shape: f32[1,32], index: 1, kind: input, shape index: {}]   ;;  %s378_s2 = inlined_call_operand.vmem [shape: f32[1,32], index: 2, kind: input, shape index: {}]   ;;  %s379_s4 = inlined_call_operand.vmem [shape: f32[3,1,32], index: 4, kind: input, shape index: {}]   ;;  %s380_s3 = inlined_call_operand.vmem [shape: bf16[3,32,32], index: 3, kind: input, shape index: {}]   ;;  %s381_s5 = inlined_call_operand.vmem [shape: bf16[3,16,32], index: 5, kind: output, shape index: {}]  }
   0x1   :  { %v21_v0 = vld [vmem:[%s376_s0] sm:$0xff]  ;;  %v22_v2 = vld [vmem:[%s376_s0 + $0x8] sm:$0xff]  ;;  %269 = vrcp.f32 %v275_v4  ;;  %v260_v22 = vld [vmem:[%s380_s3 + $0x18] sm:$0xff] }
   0x2   :  { %v24_v1 = vsel %vm23_vm0, %v21_v0, 0.0  ;;  %v27_v3 = vsel %vm23_vm0, %v22_v2, 0.0  ;;  %v258_v21 = vld [vmem:[%s380_s3 + $0x8] sm:$0xff]  ;;  %158 = vmatpush.bf16.msra.mxu1 %v260_v22  ;;  %v257_v25 = vld [vmem:[%s380_s3] sm:$0xff]  ;;  %v259_v26 = vld [vmem:[%s380_s3 + $0x10] sm:$0xff] }
   0x3   :  { %25 = vadd.xlane.f32.xlu0 %v24_v1  ;;  %v262_v23 = vld [vmem:[%s380_s3 + $0x28] sm:$0xff]  ;;  %117 = vmatpush.bf16.msra.mxu0 %v258_v21  ;;  %v261_v28 = vld [vmem:[%s380_s3 + $0x20] sm:$0xff] }
   0x4   :  { %199 = vmatpush.bf16.msra.mxu2 %v262_v23  ;;  %v264_v46 = vld [vmem:[%s377_s1] ss:$0 sm:$0xff]  ;;  %v267_v57 = vld [vmem:[%s379_s4 + $0x1] ss:$0 sm:$0xff] }
   0x5   :  { %v265_v51 = vld [vmem:[%s378_s2] ss:$0 sm:$0xff] }
   0x6   :  { %159 = vmatpush.bf16.msra.mxu1 %v259_v26  ;;  %v266_v56 = vld [vmem:[%s379_s4] ss:$0 sm:$0xff] }
   0x7   :  { %v270_v5 = vpop.eup %269  ;;  %118 = vmatpush.bf16.msra.mxu0 %v257_v25 }
   0x8   :  { %v31_v6 = vmul.f32 32.0, %v270_v5  ;;  %vm35_vm1 = vweird.f32 %v270_v5  ;;  %200 = vmatpush.bf16.msra.mxu2 %v261_v28 }
   0xa   :  { %v32_v7 = vsub.f32 1.0, %v31_v6 }
   0xb   :  { %28 = vadd.xlane.f32.xlu0 %v27_v3 }
   0xc   :  { %v33_v8 = vmul.f32 %v270_v5, %v32_v7 }
   0xe   :  { %v34_v9 = vadd.f32 %v270_v5, %v33_v8 }
  0x10   :  { %v36_v10 = vsel %vm35_vm1, %v270_v5, %v34_v9 }
  0x76   :  { %v26_v11 = vpop.xlane.xlu0 %25 }
  0x77   :  { %v37_v12 = vmul.f32 %v36_v10, %v26_v11 }
  0x79   :  { %v39_v13 = vsub.f32 %v21_v0, %v37_v12  ;;  %v268_v0 = vld [vmem:[%s379_s4 + $0x2] ss:$0 sm:$0xff] }
  0x7b   :  { %v41_v14 = vmul.f32 %v39_v13, %v39_v13 }
  0x7d   :  { %v43_v15 = vsel %vm23_vm0, %v41_v14, 0.0 }
  0x7e   :  { %44 = vadd.xlane.f32.xlu1 %v43_v15  ;;  %v29_v16 = vpop.xlane.xlu0 %28 }
  0x7f   :  { %v38_v17 = vmul.f32 %v36_v10, %v29_v16 }
  0x81   :  { %v40_v18 = vsub.f32 %v22_v2, %v38_v17 }
  0x83   :  { %v42_v19 = vmul.f32 %v40_v18, %v40_v18 }
  0x85   :  { %v46_v20 = vsel %vm23_vm0, %v42_v19, 0.0 }
  0x86   :  { %47 = vadd.xlane.f32.xlu1 %v46_v20 }
  0xf1   :  { %v45_v24 = vpop.xlane.xlu1 %44 }
  0xf2   :  { %v49_v27 = vmul.f32 %v45_v24, %v36_v10 }
  0xf4   :  { %v51_v29 = vadd.f32 1e-05, %v49_v27 }
  0xf6   :  { %271 = vrsqrt.f32 %v51_v29  ;;  %vm59_vm3 = vweird.f32 %v51_v29 }
  0xf9   :  { %v48_v30 = vpop.xlane.xlu1 %47 }
  0xfa   :  { %v50_v31 = vmul.f32 %v48_v30, %v36_v10 }
  0xfc   :  { %v272_v32 = vpop.eup %271  ;;  %v52_v33 = vadd.f32 1e-05, %v50_v31 }
  0xfd   :  { %v54_v34 = vmul.f32 %v272_v32, %v51_v29  ;;  %vm60_vm2 = vweird.f32 %v272_v32 }
  0xfe   :  { %273 = vrsqrt.f32 %v52_v33  ;;  %vm61_vm4 = vmor %vm59_vm3, %vm60_vm2  ;;  %vm69_vm6 = vweird.f32 %v52_v33 }
  0xff   :  { %v55_v35 = vmul.f32 %v272_v32, %v54_v34 }
 0x101   :  { %v56_v36 = vmul.f32 0.5, %v55_v35 }
 0x103   :  { %v57_v37 = vsub.f32 1.5, %v56_v36 }
 0x104   :  { %v274_v38 = vpop.eup %273 }
 0x105   :  { %v58_v39 = vmul.f32 %v272_v32, %v57_v37  ;;  %v64_v40 = vmul.f32 %v274_v38, %v52_v33  ;;  %vm70_vm5 = vweird.f32 %v274_v38 }
 0x106   :  { %vm71_vm7 = vmor %vm69_vm6, %vm70_vm5 }
 0x107   :  { %v65_v41 = vmul.f32 %v274_v38, %v64_v40  ;;  %v62_v42 = vsel %vm61_vm4, %v272_v32, %v58_v39 }
 0x108   :  { %v73_v45 = vmul.f32 %v62_v42, %v39_v13 }
 0x109   :  { %v66_v43 = vmul.f32 0.5, %v65_v41 }
 0x10a   :  { %v79_v50 = vmul.f32 %v264_v46, %v73_v45 }
 0x10b   :  { %v67_v44 = vsub.f32 1.5, %v66_v43 }
 0x10c   :  { %v85_v53 = vadd.f32 %v265_v51, %v79_v50 }
 0x10d   :  { %v68_v47 = vmul.f32 %v274_v38, %v67_v44 }
 0x10f   :  { %v72_v48 = vsel %vm71_vm7, %v274_v38, %v68_v47 }
 0x110   :  { %v74_v49 = vmul.f32 %v72_v48, %v40_v18 }
 0x112   :  { %v80_v52 = vmul.f32 %v264_v46, %v74_v49 }
 0x114   :  { %v86_v54 = vadd.f32 %v265_v51, %v80_v52 }
 0x116   :  { %v87_v55 = vpack.c.bf16 %v86_v54, %v85_v53 }
 0x118   :  { %224 = vmatmul.msk.bf16.vlgmr.msra.gmra.mxu0 %vm23_vm0, %v87_v55  ;;  %238 = vmatmul.msk.bf16.vlgmr.msra.gmra.mxu1 %vm23_vm0, %v87_v55 }
 0x119   :  { %254 = vmatmul.msk.bf16.vlgmr.msra.gmra.mxu2 %vm23_vm0, %v87_v55 }
 0x195   :  { %v120_v58 = vpop.f32.mrf.mxu0  ;;  %v161_v59 = vpop.f32.mrf.mxu1 }
 0x196   :  { %v121_v60 = vadd.f32 %v266_v56, %v120_v58  ;;  %v162_v61 = vadd.f32 %v267_v57, %v161_v59 }
 0x198   :  { %v125_v62 = vpack.c.bf16 %v121_v60, %v121_v60  ;;  %v166_v63 = vpack.c.bf16 %v162_v61, %v162_v61 }
 0x19a   :  { %128 = vst.msk [vmem:[%s381_s5] sm:$0xf] %vm127_vm8, %v125_v62 }
 0x19b   :  { %239 = vst.msk [vmem:[%s381_s5 + $0x8] sm:$0xf] %vm127_vm8, %v166_v63 }
 0x19c   :  { %v202_v1 = vpop.f32.mrf.mxu2 }
 0x19d   :  { %v203_v2 = vadd.f32 %v268_v0, %v202_v1  ;;  %v122_v3 = vpop.f32.mrf.mxu0  ;;  %v163_v4 = vpop.f32.mrf.mxu1 }
 0x19e   :  { %v123_v5 = vadd.f32 %v266_v56, %v122_v3  ;;  %v164_v6 = vadd.f32 %v267_v57, %v163_v4 }
 0x19f   :  { %v207_v7 = vpack.c.bf16 %v203_v2, %v203_v2 }
 0x1a0   :  { %v126_v8 = vpack.c.bf16 %v123_v5, %v123_v5  ;;  %v167_v9 = vpack.c.bf16 %v164_v6, %v164_v6 }
 0x1a1   :  { %255 = vst.msk [vmem:[%s381_s5 + $0x10] sm:$0xf] %vm127_vm8, %v207_v7 }
 0x1a2   :  { %129 = vst.msk [vmem:[%s381_s5 + $0x4] sm:$0xf] %vm127_vm8, %v126_v8 }
 0x1a3   :  { %240 = vst.msk [vmem:[%s381_s5 + $0xc] sm:$0xf] %vm127_vm8, %v167_v9 }
 0x1a4   :  { %v204_v10 = vpop.f32.mrf.mxu2 }
 0x1a5   :  { %v205_v11 = vadd.f32 %v268_v0, %v204_v10 }
 0x1a7   :  { %v208_v12 = vpack.c.bf16 %v205_v11, %v205_v11 }
 0x1a9   :  { %256 = vst.msk [vmem:[%s381_s5 + $0x14] sm:$0xf] %vm127_vm8, %v208_v12 }

// kernel: _lambda_.14
= control target key start
LH: loop header
LB: loop body
LE: loop exit
PB: predicated region body
PF: predicated region fallthrough
CT: control target
= control target key end

     0   :  { %vm23_vm0 = vcmask 261120   ;;  %v181_v4 = vmov 32.0   ;;  %s241_s0 = inlined_call_operand.vmem [shape: f32[16,32], index: 0, kind: input, shape index: {}]   ;;  %s242_s1 = inlined_call_operand.vmem [shape: f32[1,32], index: 1, kind: input, shape index: {}]   ;;  %s243_s2 = inlined_call_operand.vmem [shape: f32[1,32], index: 2, kind: input, shape index: {}]   ;;  %s244_s4 = inlined_call_operand.vmem [shape: f32[1,1,128], index: 4, kind: input, shape index: {}]   ;;  %s245_s3 = inlined_call_operand.vmem [shape: bf16[1,32,128], index: 3, kind: input, shape index: {}]   ;;  %s246_s5 = inlined_call_operand.vmem [shape: bf16[1,16,128], index: 5, kind: output, shape index: {}]  }
   0x1   :  { %v21_v0 = vld [vmem:[%s241_s0] sm:$0xff]  ;;  %v22_v2 = vld [vmem:[%s241_s0 + $0x8] sm:$0xff]  ;;  %171 = vrcp.f32 %v181_v4 }
   0x2   :  { %v24_v1 = vsel %vm23_vm0, %v21_v0, 0.0  ;;  %v27_v3 = vsel %vm23_vm0, %v22_v2, 0.0  ;;  %v161_v21 = vld [vmem:[%s245_s3 + $0x8] sm:$0xff]  ;;  %v160_v23 = vld [vmem:[%s245_s3] sm:$0xff] }
   0x3   :  { %25 = vadd.xlane.f32.xlu0 %v24_v1  ;;  %117 = vmatpush.bf16.msra.mxu0 %v161_v21  ;;  %v168_v42 = vld [vmem:[%s242_s1] ss:$0 sm:$0xff] }
   0x4   :  { %v169_v47 = vld [vmem:[%s243_s2] ss:$0 sm:$0xff] }
   0x5   :  { %v170_v52 = vld [vmem:[%s244_s4] ss:$0 sm:$0xff] }
   0x7   :  { %v172_v5 = vpop.eup %171  ;;  %118 = vmatpush.bf16.msra.mxu0 %v160_v23 }
   0x8   :  { %v31_v6 = vmul.f32 32.0, %v172_v5  ;;  %vm35_vm1 = vweird.f32 %v172_v5 }
   0xa   :  { %v32_v7 = vsub.f32 1.0, %v31_v6 }
   0xb   :  { %28 = vadd.xlane.f32.xlu0 %v27_v3 }
   0xc   :  { %v33_v8 = vmul.f32 %v172_v5, %v32_v7 }
   0xe   :  { %v34_v9 = vadd.f32 %v172_v5, %v33_v8 }
  0x10   :  { %v36_v10 = vsel %vm35_vm1, %v172_v5, %v34_v9 }
  0x76   :  { %v26_v11 = vpop.xlane.xlu0 %25 }
  0x77   :  { %v37_v12 = vmul.f32 %v36_v10, %v26_v11 }
  0x79   :  { %v39_v13 = vsub.f32 %v21_v0, %v37_v12 }
  0x7b   :  { %v41_v14 = vmul.f32 %v39_v13, %v39_v13 }
  0x7d   :  { %v43_v15 = vsel %vm23_vm0, %v41_v14, 0.0 }
  0x7e   :  { %44 = vadd.xlane.f32.xlu1 %v43_v15  ;;  %v29_v16 = vpop.xlane.xlu0 %28 }
  0x7f   :  { %v38_v17 = vmul.f32 %v36_v10, %v29_v16 }
  0x81   :  { %v40_v18 = vsub.f32 %v22_v2, %v38_v17 }
  0x83   :  { %v42_v19 = vmul.f32 %v40_v18, %v40_v18 }
  0x85   :  { %v46_v20 = vsel %vm23_vm0, %v42_v19, 0.0 }
  0x86   :  { %47 = vadd.xlane.f32.xlu1 %v46_v20 }
  0xf1   :  { %v45_v22 = vpop.xlane.xlu1 %44 }
  0xf2   :  { %v49_v24 = vmul.f32 %v45_v22, %v36_v10 }
  0xf4   :  { %v51_v25 = vadd.f32 1e-05, %v49_v24 }
  0xf6   :  { %173 = vrsqrt.f32 %v51_v25  ;;  %vm59_vm3 = vweird.f32 %v51_v25 }
  0xf9   :  { %v48_v26 = vpop.xlane.xlu1 %47 }
  0xfa   :  { %v50_v27 = vmul.f32 %v48_v26, %v36_v10 }
  0xfc   :  { %v174_v28 = vpop.eup %173  ;;  %v52_v29 = vadd.f32 1e-05, %v50_v27 }
  0xfd   :  { %v54_v30 = vmul.f32 %v174_v28, %v51_v25  ;;  %vm60_vm2 = vweird.f32 %v174_v28 }
  0xfe   :  { %175 = vrsqrt.f32 %v52_v29  ;;  %vm61_vm4 = vmor %vm59_vm3, %vm60_vm2  ;;  %vm69_vm6 = vweird.f32 %v52_v29 }
  0xff   :  { %v55_v31 = vmul.f32 %v174_v28, %v54_v30 }
 0x101   :  { %v56_v32 = vmul.f32 0.5, %v55_v31 }
 0x103   :  { %v57_v33 = vsub.f32 1.5, %v56_v32 }
 0x104   :  { %v176_v34 = vpop.eup %175 }
 0x105   :  { %v58_v35 = vmul.f32 %v174_v28, %v57_v33  ;;  %v64_v36 = vmul.f32 %v176_v34, %v52_v29  ;;  %vm70_vm5 = vweird.f32 %v176_v34 }
 0x106   :  { %vm71_vm7 = vmor %vm69_vm6, %vm70_vm5 }
 0x107   :  { %v65_v37 = vmul.f32 %v176_v34, %v64_v36  ;;  %v62_v38 = vsel %vm61_vm4, %v174_v28, %v58_v35 }
 0x108   :  { %v73_v41 = vmul.f32 %v62_v38, %v39_v13 }
 0x109   :  { %v66_v39 = vmul.f32 0.5, %v65_v37 }
 0x10a   :  { %v79_v46 = vmul.f32 %v168_v42, %v73_v41 }
 0x10b   :  { %v67_v40 = vsub.f32 1.5, %v66_v39 }
 0x10c   :  { %v85_v49 = vadd.f32 %v169_v47, %v79_v46 }
 0x10d   :  { %v68_v43 = vmul.f32 %v176_v34, %v67_v40 }
 0x10f   :  { %v72_v44 = vsel %vm71_vm7, %v176_v34, %v68_v43 }
 0x110   :  { %v74_v45 = vmul.f32 %v72_v44, %v40_v18 }
 0x112   :  { %v80_v48 = vmul.f32 %v168_v42, %v74_v45 }
 0x114   :  { %v86_v50 = vadd.f32 %v169_v47, %v80_v48 }
 0x116   :  { %v87_v51 = vpack.c.bf16 %v86_v50, %v85_v49 }
 0x118   :  { %159 = vmatmul.msk.bf16.vlgmr.msra.gmra.mxu0 %vm23_vm0, %v87_v51 }
 0x195   :  { %v120_v53 = vpop.f32.mrf.mxu0 }
 0x196   :  { %v121_v54 = vadd.f32 %v170_v52, %v120_v53 }
 0x198   :  { %v125_v55 = vmul.f32 %v121_v54, %v121_v54 }
 0x19a   :  { %v127_v56 = vmul.f32 %v125_v55, %v121_v54 }
 0x19c   :  { %v129_v57 = vmul.f32 0.044715, %v127_v56 }
 0x19d   :  { %v122_v58 = vpop.f32.mrf.mxu0 }
 0x19e   :  { %v131_v59 = vadd.f32 %v129_v57, %v121_v54  ;;  %v123_v60 = vadd.f32 %v170_v52, %v122_v58 }
 0x1a0   :  { %v133_v61 = vmul.f32 0.7978846, %v131_v59  ;;  %v126_v62 = vmul.f32 %v123_v60, %v123_v60 }
 0x1a2   :  { %v128_v63 = vmul.f32 %v126_v62, %v123_v60  ;;  %177 = vtanh.f32 %v133_v61 }
 0x1a4   :  { %v130_v0 = vmul.f32 0.044715, %v128_v63 }
 0x1a6   :  { %v132_v1 = vadd.f32 %v130_v0, %v123_v60 }
 0x1a8   :  { %v134_v2 = vmul.f32 0.7978846, %v132_v1  ;;  %v178_v3 = vpop.eup %177 }
 0x1a9   :  { %v137_v4 = vadd.f32 1.0, %v178_v3 }
 0x1aa   :  { %179 = vtanh.f32 %v134_v2 }
 0x1ab   :  { %v139_v6 = vmul.f32 0.5, %v137_v4 }
 0x1ad   :  { %v141_v9 = vmul.f32 %v139_v6, %v121_v54 }
 0x1b0   :  { %v180_v5 = vpop.eup %179 }
 0x1b1   :  { %v138_v7 = vadd.f32 1.0, %v180_v5 }
 0x1b3   :  { %v140_v8 = vmul.f32 0.5, %v138_v7 }
 0x1b5   :  { %v142_v10 = vmul.f32 %v140_v8, %v123_v60 }
 0x1b7   :  { %v165_v11 = vpack.c.bf16 %v142_v10, %v141_v9 }
 0x1b9   :  { %166 = vst [vmem:[%s246_s5] sm:$0xff] %v165_v11  }

// kernel: _lambda_.13
= control target key start
LH: loop header
LB: loop body
LE: loop exit
PB: predicated region body
PF: predicated region fallthrough
CT: control target
= control target key end

     0   :  { %vm45_vm0 = vcmask 261120   ;;  %s139_s1 = inlined_call_operand.vmem [shape: bf16[1,32,32], index: 1, kind: input, shape index: {}]   ;;  %s140_s2 = inlined_call_operand.vmem [shape: f32[1,1,32], index: 2, kind: input, shape index: {}]   ;;  %s141_s0 = inlined_call_operand.vmem [shape: bf16[16,32], index: 0, kind: input, shape index: {}]   ;;  %s142_s3 = inlined_call_operand.vmem [shape: f32[1,16,32], index: 3, kind: input, shape index: {}]   ;;  %s143_s4 = inlined_call_operand.vmem [shape: f32[1,16,32], index: 4, kind: output, shape index: {}]  }
   0x1   :  { %v88_v0 = vld [vmem:[%s139_s1 + $0x8] sm:$0xff]  ;;  %v87_v1 = vld [vmem:[%s139_s1] sm:$0xff] }
   0x2   :  { %55 = vmatpush.bf16.msra.mxu0 %v88_v0  ;;  %v86_v2 = vld [vmem:[%s141_s0] sm:$0xff]  ;;  %v64_v9 = vld [vmem:[%s142_s3 + $0x8] sm:$0xff] }
   0x3   :  { %v89_v3 = vld [vmem:[%s140_s2] ss:$0 sm:$0xff] }
   0x4   :  { %v63_v5 = vld [vmem:[%s142_s3] sm:$0xff] }
   0x6   :  { %56 = vmatpush.bf16.msra.mxu0 %v87_v1 }
   0x9   :  { %85 = vmatmul.msk.bf16.vlgmr.msra.gmra.mxu0 %vm45_vm0, %v86_v2 }
  0x86   :  { %v58_v4 = vpop.f32.mrf.mxu0 }
  0x87   :  { %v59_v6 = vadd.f32 %v89_v3, %v58_v4 }
  0x89   :  { %v65_v7 = vadd.f32 %v63_v5, %v59_v6 }
  0x8b   :  { %67 = vst.msk [vmem:[%s143_s4] sm:$0xff] %vm45_vm0, %v65_v7 }
  0x8e   :  { %v60_v8 = vpop.f32.mrf.mxu0 }
  0x8f   :  { %v61_v10 = vadd.f32 %v89_v3, %v60_v8 }
  0x91   :  { %v66_v11 = vadd.f32 %v64_v9, %v61_v10 }
  0x93   :  { %68 = vst.msk [vmem:[%s143_s4 + $0x8] sm:$0xff] %vm45_vm0, %v66_v11 }

// kernel: _lambda_.12
= control target key start
LH: loop header
LB: loop body
LE: loop exit
PB: predicated region body
PF: predicated region fallthrough
CT: control target
= control target key end

     0   :  { %s954_s12 = smov 0   ;;  %s956_s13 = smov 0   ;;  %s1102_s0 = inlined_call_operand.vmem [shape: bf16[3,2,8,32], index: 0, kind: input, shape index: {}, may-alias: {0,1,2}]   ;;  %s1103_s1 = inlined_call_operand.vmem [shape: bf16[3,2,8,32], index: 1, kind: input, shape index: {}, may-alias: {0,1,2}]   ;;  %s1104_s2 = inlined_call_operand.vmem [shape: bf16[3,2,8,32], index: 2, kind: input, shape index: {}, may-alias: {0,1,2}]   ;;  %s1105_s3 = inlined_call_operand.vmem [shape: bf16[2,8,32], index: 3, kind: output, shape index: {}]  }
   0x1   :  { %s958_s14 = smov 0  }
   0x2 LB: > { %s32_s15 = sadd.s32 1, %s919_s13  ;;  %p818_p0 = scmp.ge.s32.totalorder %s923_s14, 1  ;;  %s923_s14 = sphi %s958_s14, %s13_s14   ;;  %s919_s13 = sphi %s956_s13, %s1107_s13   ;;  %s915_s12 = sphi %s954_s12, %s1106_s12  }
   0x3   : > { %p34_p1 = scmp.ge.s32.totalorder %s32_s15, 2  ;;  %p192_p2 = scmp.lt.s32.totalorder %s923_s14, 3 }
   0x5   : > { %s1109_s15 = smov (%p34_p1, %s32_s15), 0  ;;  %p193_p3 = pnand %p818_p0, %p192_p2 }
   0x6   : > { %p236_p4 = scmp.lt.s32.totalorder (!%p193_p3), %s915_s12, 1  ;;  %s927_s23 = smov (!%p193_p3), 120  }
   0x7   : > { %196 = sbr.rel (%p193_p3) target bundleno = 1131 (0x46b), region = 32  ;;  %s929_s24 = smov (!%p193_p3), 112  }
   0x8   : > { %s930_s25 = smov (!%p193_p3), 104   ;;  %s931_s29 = smov (!%p193_p3), 8  }
   0x9   : > { %s932_s30 = smov (!%p193_p3), 24   ;;  %s933_s4 = smov (!%p193_p3), 16  }
   0xc   : > { %s1111_s12 = smov (!%p236_p4, %s915_s12), 1  ;;  %vm280_vm0 = vcmask 64512   ;;  %vm271_vm1 = vcmask 7168   ;;  %v925_v3 = vmov -inf   ;;  %v926_v10 = vmov 0  }
   0xd   : > { %s972_s16 = sshll.u32 %s1111_s12, 2  ;;  %272 = vst.msk [vmem:[#allocation2] sm:$0xff] %vm271_vm1, %v925_v3  ;;  %874 = vset.pattern.permute.xlu1 %v926_v10  ;;  %875 = vset.pattern.permute.xlu2 %v926_v10  ;;  %v928_v11 = vmov 0.0   ;;  %vm343_vm2 = vcmask 1043456   ;;  %vm694_vm3 = vcmask 130048   ;;  %vm696_vm4 = vcmask 195584  }
   0xe   : > { %s978_s19 = scalar_lea.vmem %s1103_s1, %s972_s16  ;;  %s986_s22 = scalar_lea.vmem %s1102_s0, %s972_s16  ;;  %273 = vst.msk [vmem:[#allocation2 + $0x8] sm:$0xff] %vm271_vm1, %v925_v3  ;;  %876 = vset.pattern.permute.xlu0 %v926_v10  ;;  %vm699_vm5 = vcmask 257024  }
   0xf   : > { %v823_v0 = vld [vmem:[%s978_s19 + $0x8] sm:$0xf]  ;;  %v285_v2 = vld [vmem:[%s986_s22] sm:$0xf]  ;;  %274 = vst.msk [vmem:[#allocation2 + $0x10] sm:$0xff] %vm271_vm1, %v925_v3  ;;  %s1033_s28 = scalar_lea.vmem %s1104_s2, %s972_s16  ;;  %s265_s7 = scalar_lea.vmem %s1105_s3, %s972_s16 }
  0x10   : > { %v293_v1 = vsel %vm280_vm0, %v823_v0, 0  ;;  %275 = vst.msk [vmem:[#allocation2 + $0x18] sm:$0xff] %vm271_vm1, %v925_v3  ;;  %v827_v7 = vld [vmem:[%s978_s19 + $0x8] sm:$0xf]  ;;  %v549_v17 = vld [vmem:[%s986_s22] sm:$0xf] }
  0x11   : > { %302 = vmatpush.bf16.xpose.msra.mxu0 %v293_v1  ;;  %v372_v8 = vunpack.c.l.b16 %v827_v7  ;;  %276 = vst.msk [vmem:[#allocation3] sm:$0xff] %vm271_vm1, %v928_v11  ;;  %v831_v12 = vld [vmem:[%s978_s19 + $0x8] sm:$0xf]  ;;  %v553_v19 = vunpack.c.l.b16 %v549_v17  ;;  %v363_v23 = vld [vmem:[%s986_s22] sm:$0xf] }
  0x12   : > { %277 = vst.msk [vmem:[#allocation3 + $0x8] sm:$0xff] %vm271_vm1, %v928_v11  ;;  %v465_v13 = vunpack.c.l.b16 %v831_v12  ;;  %v835_v15 = vld [vmem:[%s978_s19 + $0x8] sm:$0xf]  ;;  %v367_v26 = vunpack.c.l.b16 %v363_v23  ;;  %v456_v28 = vld [vmem:[%s986_s22] sm:$0xf] }
  0x13   : > { %v373_v9 = vpack.c.b16 %v372_v8, %v372_v8  ;;  %278 = vst.msk [vmem:[#allocation3 + $0x10] sm:$0xff] %vm271_vm1, %v928_v11  ;;  %v558_v16 = vunpack.c.l.b16 %v835_v15  ;;  %v554_v20 = vpack.c.b16 %v553_v19, %v553_v19  ;;  %v460_v29 = vunpack.c.l.b16 %v456_v28  ;;  %v824_v34 = vld [vmem:[%s1033_s28 + $0x10] sm:$0xf] }
  0x14   : > { %279 = vst.msk [vmem:[#allocation3 + $0x18] sm:$0xff] %vm271_vm1, %v928_v11  ;;  %v466_v14 = vpack.c.b16 %v465_v13, %v465_v13  ;;  %v1013_v21 = vld [vmem:[#allocation2] sm:$0xff]  ;;  %v368_v27 = vpack.c.b16 %v367_v26, %v367_v26  ;;  %v345_v35 = vsel %vm343_vm2, %v824_v34, 0  ;;  %v828_v57 = vld [vmem:[%s1033_s28 + $0x10] sm:$0xf] }
  0x15   : > { %281 = vst.msk [vmem:[#allocation4] sm:$0xff] %vm280_vm0, %v928_v11  ;;  %v559_v18 = vpack.c.b16 %v558_v16, %v558_v16  ;;  %v461_v30 = vpack.c.b16 %v460_v29, %v460_v29  ;;  %354 = vmatpush.bf16.msra.mxu1 %v345_v35  ;;  %v430_v58 = vunpack.c.l.b16 %v828_v57  ;;  %v832_v61 = vld [vmem:[%s1033_s28 + $0x10] sm:$0xf] }
  0x16   : > { %282 = vst.msk [vmem:[#allocation4 + $0x8] sm:$0xff] %vm280_vm0, %v928_v11  ;;  %467 = vrot.lane.b32.xlu2 %v466_v14, %s929_s24  ;;  %v523_v62 = vunpack.c.l.b16 %v832_v61  ;;  %v836_v8 = vld [vmem:[%s1033_s28 + $0x10] sm:$0xf] }
  0x17   : > { %283 = vst.msk [vmem:[#allocation4 + $0x10] sm:$0xff] %vm280_vm0, %v928_v11  ;;  %v431_v60 = vpack.c.b16 %v430_v58, %v430_v58  ;;  %v582_v1 = vld [vmem:[#allocation2 + $0x18] sm:$0xff]  ;;  %v489_v10 = vld [vmem:[#allocation2 + $0x10] sm:$0xff] }
  0x18   : > { %825 = vmatmul.msk.bf16.vlgmr.msra.gmra.mxu0 %vm280_vm0, %v285_v2  ;;  %284 = vst.msk [vmem:[#allocation4 + $0x18] sm:$0xff] %vm280_vm0, %v928_v11  ;;  %v524_v63 = vpack.c.b16 %v523_v62, %v523_v62  ;;  %v324_v23 = vld [vmem:[#allocation3] sm:$0xff] }
  0x1e   : > { %560 = vrot.lane.b32.xlu2 %v559_v18, %s930_s25 }
  0x26   : > { %555 = vrot.lane.b32.xlu2 %v554_v20, %s930_s25 }
  0x70   : > { %v468_v33 = vpop.permute.xlu2 %467 }
  0x71   : > { %v473_v36 = vsel %vm280_vm0, %v468_v33, 0 }
  0x72   : > { %482 = vmatpush.bf16.xpose.msrb.mxu1 %v473_v36 }
  0x78   : > { %v561_v37 = vpop.permute.xlu2 %560 }
  0x79   : > { %v566_v38 = vsel %vm280_vm0, %v561_v37, 0 }
  0x7a   : > { %575 = vmatpush.bf16.xpose.msrb.mxu0 %v566_v38 }
  0x80   : > { %v556_v39 = vpop.permute.xlu2 %555 }
  0x81   : > { %837 = vmatmul.msk.bf16.vlgmr.msrb.gmra.mxu0 %vm280_vm0, %v556_v39 }
  0x95   : > { %v994_v4 = vpop.f32.mrf.mxu0 }
  0x96   : > { %v309_v5 = vsel %vm280_vm0, %v994_v4, -inf }
  0x97   : > { %310 = vmax.xlane.f32.xlu0 %v309_v5  ;;  %v396_v5 = vld [vmem:[#allocation2 + $0x8] sm:$0xff] }
  0x9d   : > { %v306_v6 = vpop.f32.mrf.mxu0 }
  0xab   : > { %374 = vrot.lane.b32.xlu0 %v373_v9, %s927_s23  ;;  %v616_v9 = vunpack.c.l.b16 %v836_v8 }
  0xad   : > { %v617_v12 = vpack.c.b16 %v616_v9, %v616_v9 }
  0xfe   : > { %v1044_v47 = vpop.f32.mrf.mxu0 }
  0xff   : > { %v583_v48 = vsel %vm280_vm0, %v1044_v47, -inf }
 0x100   : > { %584 = vmax.xlane.f32.xlu0 %v583_v48 }
 0x106   : > { %v579_v49 = vpop.f32.mrf.mxu0 }
 0x10a   : > { %v311_v22 = vpop.xlane.xlu0 %310 }
 0x10b   : > { %v1018_v24 = vmax.f32 %v1013_v21, %v311_v22 }
 0x10d   : > { %v313_v25 = vsub.f32 %v1013_v21, %v1018_v24  ;;  %362 = vst.msk [vmem:[#allocation2] sm:$0xff] %vm271_vm1, %v1018_v24  ;;  %318 = vperm.xlu1 %874, %v1018_v24  }
 0x10f   : > { %v314_v13 = vmul.f32 1.442695, %v313_v25 }
 0x115   : > { %369 = vrot.lane.b32.xlu1 %v368_v27, %s927_s23 }
 0x11d   : > { %462 = vrot.lane.b32.xlu1 %v461_v30, %s929_s24  ;;  %v375_v31 = vpop.permute.xlu0 %374 }
 0x11e   : > { %v380_v32 = vsel %vm280_vm0, %v375_v31, 0 }
 0x11f   : > { %389 = vmatpush.bf16.xpose.msra.mxu2 %v380_v32 }
 0x173   : > { %v585_v2 = vpop.xlane.xlu0 %584 }
 0x174   : > { %v586_v3 = vmax.f32 %v582_v1, %v585_v2 }
 0x176   : > { %641 = vst.msk [vmem:[#allocation2 + $0x18] sm:$0xff] %vm271_vm1, %v586_v3 }
 0x17f   : > { %v319_v40 = vpop.permute.xlu1 %318 }
 0x180   : > { %v321_v41 = vsub.f32 %v994_v4, %v319_v40  ;;  %v587_v4 = vsub.f32 %v582_v1, %v586_v3 }
 0x182   : > { %v322_v42 = vmul.f32 1.442695, %v321_v41 }
 0x184   : > { %877 = vpow2.f32 %v322_v42  ;;  %v588_v42 = vmul.f32 1.442695, %v587_v4 }
 0x185   : > { %879 = vpow2.f32 %v314_v13 }
 0x187   : > { %v370_v43 = vpop.permute.xlu1 %369 }
 0x188   : > { %829 = vmatmul.msk.bf16.vlgmr.msra.gmra.mxu2 %vm280_vm0, %v370_v43  ;;  %v332_v43 = vld [vmem:[#allocation4] sm:$0xff] }
 0x18a   : > { %v878_v44 = vpop.eup %877 }
 0x18b   : > { %v339_v45 = vpack.c.bf16 %v878_v44, %v878_v44  ;;  %v326_v0 = vsel %vm280_vm0, %v878_v44, 0.0  ;;  %v880_v18 = vpop.eup %879 }
 0x18c   : > { %v325_v24 = vmul.f32 %v880_v18, %v324_v23 }
 0x18d   : > { %826 = vmatmul.msk.bf16.vlgmr.msra.gmra.mxu1 %vm280_vm0, %v339_v45 }
 0x18f   : > { %v463_v46 = vpop.permute.xlu1 %462 }
 0x19d   : > { %833 = vmatmul.msk.bf16.vlgmr.msrb.gmra.mxu1 %vm280_vm0, %v463_v46 }
 0x20a   : > { %v1048_v50 = vpop.f32.mrf.mxu1 }
 0x20b   : > { %v391_v51 = vpop.f32.mrf.mxu2 }
 0x20c   : > { %v397_v52 = vsel %vm280_vm0, %v391_v51, -inf }
 0x20d   : > { %398 = vmax.xlane.f32.xlu1 %v397_v52 }
 0x212   : > { %v358_v53 = vpop.f32.mrf.mxu1 }
 0x213   : > { %v393_v54 = vpop.f32.mrf.mxu2 }
 0x21a   : > { %v1051_v55 = vpop.f32.mrf.mxu1 }
 0x21b   : > { %v490_v56 = vsel %vm280_vm0, %v1051_v55, -inf }
 0x21c   : > { %491 = vmax.xlane.f32.xlu2 %v490_v56 }
 0x222   : > { %v486_v59 = vpop.f32.mrf.mxu1 }
 0x223   : > { %v413_v59 = vld [vmem:[#allocation3 + $0x8] sm:$0xff] }
 0x226   : > { %432 = vrot.lane.b32.xlu1 %v431_v60, %s927_s23 }
 0x22e   : > { %525 = vrot.lane.b32.xlu1 %v524_v63, %s929_s24 }
 0x258   : > { %327 = vadd.xlane.f32.xlu1 %v326_v0 }
 0x280   : > { %v399_v6 = vpop.xlane.xlu1 %398 }
 0x281   : > { %v400_v7 = vmax.f32 %v396_v5, %v399_v6 }
 0x283   : > { %455 = vst.msk [vmem:[#allocation2 + $0x8] sm:$0xff] %vm271_vm1, %v400_v7  ;;  %406 = vperm.xlu2 %875, %v400_v7   ;;  %v401_v16 = vsub.f32 %v396_v5, %v400_v7 }
 0x285   : > { %v402_v17 = vmul.f32 1.442695, %v401_v16 }
 0x287   : > { %881 = vpow2.f32 %v402_v17 }
 0x28b   : > { %592 = vperm.xlu2 %875, %v586_v3   ;;  %v421_v3 = vld [vmem:[#allocation4 + $0x8] sm:$0xff] }
 0x28d   : > { %v882_v19 = vpop.eup %881 }
 0x28e   : > { %v414_v60 = vmul.f32 %v882_v19, %v413_v59 }
 0x28f   : > { %v492_v11 = vpop.xlane.xlu2 %491 }
 0x290   : > { %v493_v14 = vmax.f32 %v489_v10, %v492_v11 }
 0x292   : > { %v494_v15 = vsub.f32 %v489_v10, %v493_v14  ;;  %548 = vst.msk [vmem:[#allocation2 + $0x10] sm:$0xff] %vm271_vm1, %v493_v14  ;;  %499 = vperm.xlu0 %876, %v493_v14   ;;  %v607_v10 = vld [vmem:[#allocation4 + $0x18] sm:$0xff] }
 0x293   : > { %618 = vrot.lane.b32.xlu2 %v617_v12, %s930_s25 }
 0x294   : > { %v495_v48 = vmul.f32 1.442695, %v494_v15 }
 0x298   : > { %v433_v20 = vpop.permute.xlu1 %432 }
 0x299   : > { %v438_v21 = vsel %vm343_vm2, %v433_v20, 0 }
 0x29a   : > { %447 = vmatpush.bf16.msra.mxu3 %v438_v21  ;;  %v514_v21 = vld [vmem:[#allocation4 + $0x10] sm:$0xff] }
 0x29b   : > { %335 = vperm.xlu2 %875, %v880_v18   ;;  %v506_v18 = vld [vmem:[#allocation3 + $0x10] sm:$0xff] }
 0x2a0   : > { %v526_v22 = vpop.permute.xlu1 %525 }
 0x2a1   : > { %v531_v36 = vsel %vm343_vm2, %v526_v22, 0 }
 0x2a2   : > { %540 = vmatpush.bf16.msrb.mxu3 %v531_v36 }
 0x2a3   : > { %424 = vperm.xlu2 %875, %v882_v19  }
 0x2cb   : > { %v328_v25 = vpop.xlane.xlu1 %327 }
 0x2cc   : > { %v329_v26 = vadd.f32 %v328_v25, %v325_v24 }
 0x2ce   : > { %331 = vst.msk [vmem:[#allocation3] sm:$0xff] %vm271_vm1, %v329_v26 }
 0x2dd   : > { %v407_v27 = vpop.permute.xlu2 %406 }
 0x2de   : > { %v409_v28 = vsub.f32 %v391_v51, %v407_v27 }
 0x2e0   : > { %v410_v29 = vmul.f32 1.442695, %v409_v28 }
 0x2e2   : > { %883 = vpow2.f32 %v410_v29 }
 0x2e5   : > { %v593_v30 = vpop.permute.xlu2 %592 }
 0x2e6   : > { %v595_v31 = vsub.f32 %v1044_v47, %v593_v30 }
 0x2e8   : > { %v884_v32 = vpop.eup %883  ;;  %v596_v33 = vmul.f32 1.442695, %v595_v31 }
 0x2e9   : > { %v415_v34 = vsel %vm280_vm0, %v884_v32, 0.0  ;;  %v428_v35 = vpack.c.bf16 %v884_v32, %v884_v32 }
 0x2ea   : > { %885 = vpow2.f32 %v596_v33  ;;  %416 = vadd.xlane.f32.xlu0 %v415_v34 }
 0x2eb   : > { %830 = vmatmul.msk.bf16.vlgmr.msra.gmra.mxu3 %vm280_vm0, %v428_v35  ;;  %887 = vpow2.f32 %v588_v42 }
 0x2ec   : > { %889 = vpow2.f32 %v495_v48 }
 0x2ed   : > { %v619_v37 = vpop.permute.xlu2 %618 }
 0x2ee   : > { %v624_v38 = vsel %vm343_vm2, %v619_v37, 0 }
 0x2ef   : > { %633 = vmatpush.bf16.msrb.mxu2 %v624_v38 }
 0x2f0   : > { %v886_v39 = vpop.eup %885 }
 0x2f1   : > { %v601_v40 = vsel %vm280_vm0, %v886_v39, 0.0  ;;  %v614_v41 = vpack.c.bf16 %v886_v39, %v886_v39  ;;  %v888_v47 = vpop.eup %887 }
 0x2f2   : > { %602 = vadd.xlane.f32.xlu1 %v601_v40  ;;  %v890_v53 = vpop.eup %889 }
 0x2f3   : > { %838 = vmatmul.msk.bf16.vlgmr.msrb.gmra.mxu2 %vm280_vm0, %v614_v41  ;;  %v507_v19 = vmul.f32 %v890_v53, %v506_v18 }
 0x2f5   : > { %v336_v44 = vpop.permute.xlu2 %335 }
 0x2f6   : > { %v338_v45 = vmul.f32 %v336_v44, %v332_v43 }
 0x2f8   : > { %v360_v46 = vadd.f32 %v1048_v50, %v338_v45  ;;  %v646_v50 = vld [vmem:[#allocation3] sm:$0xff] }
 0x2fa   : > { %361 = vst.msk [vmem:[#allocation4] sm:$0xff] %vm280_vm0, %v360_v46 }
 0x2fd   : > { %v425_v4 = vpop.permute.xlu2 %424 }
 0x2fe   : > { %610 = vperm.xlu0 %876, %v888_v47   ;;  %v427_v5 = vmul.f32 %v425_v4, %v421_v3 }
 0x301   : > { %v645_v40 = vld [vmem:[#allocation4] sm:$0xff] }
 0x304   : > { %v500_v49 = vpop.permute.xlu0 %499 }
 0x305   : > { %v502_v51 = vsub.f32 %v1051_v55, %v500_v49  ;;  %v599_v55 = vld [vmem:[#allocation3 + $0x18] sm:$0xff] }
 0x306   : > { %v600_v63 = vmul.f32 %v888_v47, %v599_v55 }
 0x307   : > { %v503_v52 = vmul.f32 1.442695, %v502_v51 }
 0x309   : > { %891 = vpow2.f32 %v503_v52 }
 0x30a   : > { %893 = vrcp.f32 %v646_v50 }
 0x30b   : > { %517 = vperm.xlu1 %874, %v890_v53  }
 0x30f   : > { %v892_v54 = vpop.eup %891 }
 0x310   : > { %v508_v56 = vsel %vm280_vm0, %v892_v54, 0.0  ;;  %v521_v57 = vpack.c.bf16 %v892_v54, %v892_v54  ;;  %v894_v58 = vpop.eup %893 }
 0x311   : > { %509 = vadd.xlane.f32.xlu2 %v508_v56 }
 0x312   : > { %834 = vmatmul.msk.bf16.vlgmr.msrb.gmra.mxu3 %vm280_vm0, %v521_v57 }
 0x329   : > { %650 = vperm.xlu2 %875, %v894_v58  }
 0x35d   : > { %v417_v61 = vpop.xlane.xlu0 %416 }
 0x35e   : > { %v418_v62 = vadd.f32 %v417_v61, %v414_v60 }
 0x360   : > { %419 = vst.msk [vmem:[#allocation3 + $0x8] sm:$0xff] %vm271_vm1, %v418_v62 }
 0x365   : > { %v603_v0 = vpop.xlane.xlu1 %602 }
 0x366   : > { %v604_v1 = vadd.f32 %v603_v0, %v600_v63 }
 0x367   : > { %v655_v2 = vld [vmem:[#allocation3 + $0x8] sm:$0xff] }
 0x368   : > { %605 = vst.msk [vmem:[#allocation3 + $0x18] sm:$0xff] %vm271_vm1, %v604_v1  ;;  %895 = vrcp.f32 %v655_v2 }
 0x36e   : > { %v896_v6 = vpop.eup %895  ;;  %v449_v7 = vpop.f32.mrf.mxu3 }
 0x36f   : > { %v453_v8 = vadd.f32 %v449_v7, %v427_v5  ;;  %659 = vperm.xlu0 %876, %v896_v6   ;;  %v673_v9 = vld [vmem:[#allocation3 + $0x18] sm:$0xff] }
 0x370   : > { %897 = vrcp.f32 %v673_v9  ;;  %v611_v11 = vpop.permute.xlu0 %610 }
 0x371   : > { %454 = vst.msk [vmem:[#allocation4 + $0x8] sm:$0xff] %vm280_vm0, %v453_v8  ;;  %v613_v12 = vmul.f32 %v611_v11, %v607_v10 }
 0x376   : > { %v898_v13 = vpop.eup %897  ;;  %v451_v14 = vpop.f32.mrf.mxu3 }
 0x377   : > { %v635_v15 = vpop.f32.mrf.mxu2  ;;  %677 = vperm.xlu0 %876, %v898_v13  }
 0x378   : > { %v639_v16 = vadd.f32 %v635_v15, %v613_v12  ;;  %v654_v30 = vld [vmem:[#allocation4 + $0x8] sm:$0xff] }
 0x37a   : > { %640 = vst.msk [vmem:[#allocation4 + $0x18] sm:$0xff] %vm280_vm0, %v639_v16 }
 0x37d   : > { %v518_v24 = vpop.permute.xlu1 %517 }
 0x37e   : > { %v520_v25 = vmul.f32 %v518_v24, %v514_v21 }
 0x37f   : > { %v637_v17 = vpop.f32.mrf.mxu2 }
 0x381   : > { %v672_v33 = vld [vmem:[#allocation4 + $0x18] sm:$0xff] }
 0x384   : > { %v510_v20 = vpop.xlane.xlu2 %509 }
 0x385   : > { %v511_v22 = vadd.f32 %v510_v20, %v507_v19 }
 0x387   : > { %512 = vst.msk [vmem:[#allocation3 + $0x10] sm:$0xff] %vm271_vm1, %v511_v22 }
 0x38c   : > { %v651_v39 = vpop.permute.xlu2 %650 }
 0x38d   : > { %v653_v42 = vmul.f32 %v651_v39, %v645_v40 }
 0x38e   : > { %v664_v23 = vld [vmem:[#allocation3 + $0x10] sm:$0xff] }
 0x38f   : > { %899 = vrcp.f32 %v664_v23 }
 0x395   : > { %v900_v26 = vpop.eup %899  ;;  %v542_v27 = vpop.f32.mrf.mxu3 }
 0x396   : > { %v546_v28 = vadd.f32 %v542_v27, %v520_v25  ;;  %668 = vperm.xlu1 %874, %v900_v26  }
 0x398   : > { %547 = vst.msk [vmem:[#allocation4 + $0x10] sm:$0xff] %vm280_vm0, %v546_v28 }
 0x39d   : > { %v544_v29 = vpop.f32.mrf.mxu3 }
 0x39f   : > { %v663_v36 = vld [vmem:[#allocation4 + $0x10] sm:$0xff] }
 0x3e1   : > { %v660_v31 = vpop.permute.xlu0 %659 }
 0x3e2   : > { %v662_v32 = vmul.f32 %v660_v31, %v654_v30 }
 0x3e4   : > { %682 = vrot.lane.b32.xlu1 %v662_v32, %s931_s29 }
 0x3e9   : > { %v678_v34 = vpop.permute.xlu0 %677 }
 0x3ea   : > { %v680_v35 = vmul.f32 %v678_v34, %v672_v33 }
 0x3ec   : > { %690 = vrot.lane.b32.xlu0 %v680_v35, %s932_s30 }
 0x408   : > { %v669_v37 = vpop.permute.xlu1 %668 }
 0x409   : > { %v671_v38 = vmul.f32 %v669_v37, %v663_v36 }
 0x40b   : > { %686 = vrot.lane.b32.xlu2 %v671_v38, %s933_s4 }
 0x456   : > { %v683_v41 = vpop.permute.xlu1 %682 }
 0x457   : > { %v693_v43 = vsel %vm280_vm0, %v653_v42, %v683_v41 }
 0x45e   : > { %v691_v45 = vpop.permute.xlu0 %690 }
 0x465   : > { %v687_v44 = vpop.permute.xlu2 %686 }
 0x466   : > { %v695_v46 = vsel %vm694_vm3, %v693_v43, %v687_v44 }
 0x467   : > { %v697_v47 = vsel %vm696_vm4, %v695_v46, %v691_v45 }
 0x468   : > { %v698_v48 = vpack.c.bf16 %v697_v47, %v697_v47 }
 0x46a   : > { %700 = vst.msk [vmem:[%s265_s7] sm:$0xf] %vm699_vm5, %v698_v48 }
 0x46b PF: > { %s13_s14 = sadd.s32 1, %s923_s14   ;;  %s1106_s12 = smov %s919_s13 }
 0x46c   : > { %p10_p5 = scmp.ge.s32.totalorder %s13_s14, 4   ;;  %s1107_s13 = smov %s1109_s15 }
 0x46e   :  { %12 = sbr.rel (!%p10_p5) target bundleno = 2 (0x2), region = 85 }

// kernel: _lambda_.15
= control target key start
LH: loop header
LB: loop body
LE: loop exit
PB: predicated region body
PF: predicated region fallthrough
CT: control target
= control target key end

     0   :  { %vm111_vm0 = vcmask 261120   ;;  %s231_s1 = inlined_call_operand.vmem [shape: bf16[1,128,32], index: 1, kind: input, shape index: {}]   ;;  %s232_s2 = inlined_call_operand.vmem [shape: f32[1,1,32], index: 2, kind: input, shape index: {}]   ;;  %s233_s0 = inlined_call_operand.vmem [shape: bf16[16,128], index: 0, kind: input, shape index: {}]   ;;  %s234_s3 = inlined_call_operand.vmem [shape: f32[1,16,32], index: 3, kind: input, shape index: {}]   ;;  %s235_s4 = inlined_call_operand.vmem [shape: f32[1,16,32], index: 4, kind: output, shape index: {}]  }
   0x1   :  { %v162_v0 = vld [vmem:[%s231_s1 + $0x38] sm:$0xff]  ;;  %v161_v1 = vld [vmem:[%s231_s1 + $0x30] sm:$0xff]  ;;  %v160_v2 = vld [vmem:[%s231_s1 + $0x28] sm:$0xff] }
   0x2   :  { %93 = vmatpush.bf16.msra.mxu0 %v162_v0  ;;  %v159_v3 = vld [vmem:[%s231_s1 + $0x20] sm:$0xff]  ;;  %v158_v4 = vld [vmem:[%s231_s1 + $0x18] sm:$0xff]  ;;  %v157_v5 = vld [vmem:[%s231_s1 + $0x10] sm:$0xff] }
   0x3   :  { %v156_v6 = vld [vmem:[%s231_s1 + $0x8] sm:$0xff]  ;;  %v155_v7 = vld [vmem:[%s231_s1] sm:$0xff] }
   0x4   :  { %v154_v8 = vld [vmem:[%s233_s0] sm:$0xff]  ;;  %v108_v15 = vld [vmem:[%s234_s3 + $0x8] sm:$0xff] }
   0x5   :  { %v163_v9 = vld [vmem:[%s232_s2] ss:$0 sm:$0xff] }
   0x6   :  { %94 = vmatpush.bf16.msra.mxu0 %v161_v1  ;;  %v107_v11 = vld [vmem:[%s234_s3] sm:$0xff] }
   0xa   :  { %95 = vmatpush.bf16.msra.mxu0 %v160_v2 }
   0xe   :  { %96 = vmatpush.bf16.msra.mxu0 %v159_v3 }
  0x12   :  { %97 = vmatpush.bf16.msra.mxu0 %v158_v4 }
  0x16   :  { %98 = vmatpush.bf16.msra.mxu0 %v157_v5 }
  0x1a   :  { %99 = vmatpush.bf16.msra.mxu0 %v156_v6 }
  0x1e   :  { %100 = vmatpush.bf16.msra.mxu0 %v155_v7 }
  0x21   :  { %101 = vmatmul.bf16.vlgmr.msra.gmra.mxu0 %v154_v8 }
  0x9e   :  { %v102_v10 = vpop.f32.mrf.mxu0 }
  0x9f   :  { %v103_v12 = vadd.f32 %v163_v9, %v102_v10 }
  0xa1   :  { %v109_v13 = vadd.f32 %v107_v11, %v103_v12 }
  0xa3   :  { %112 = vst.msk [vmem:[%s235_s4] sm:$0xff] %vm111_vm0, %v109_v13 }
  0xa6   :  { %v104_v14 = vpop.f32.mrf.mxu0 }
  0xa7   :  { %v105_v16 = vadd.f32 %v163_v9, %v104_v14 }
  0xa9   :  { %v110_v17 = vadd.f32 %v108_v15, %v105_v16 }
  0xab   :  { %113 = vst.msk [vmem:[%s235_s4 + $0x8] sm:$0xff] %vm111_vm0, %v110_v17 }

// kernel: _lambda_.21
= control target key start
LH: loop header
LB: loop body
LE: loop exit
PB: predicated region body
PF: predicated region fallthrough
CT: control target
= control target key end

     0   :  { %vm44_vm0 = vcmask 261120   ;;  %vm117_vm1 = vcmask 523264   ;;  %s245_s1 = inlined_call_operand.vmem [shape: bf16[32,64], index: 1, kind: input, shape index: {}]   ;;  %s246_s0 = inlined_call_operand.vmem [shape: f32[16,32], index: 0, kind: input, shape index: {}]   ;;  %s247_s2 = inlined_call_operand.vmem [shape: f32[1,64], index: 2, kind: input, shape index: {}]   ;;  %s248_s4 = inlined_call_operand.vmem [shape: f32[1,128], index: 4, kind: input, shape index: {}]   ;;  %s249_s3 = inlined_call_operand.vmem [shape: bf16[64,128], index: 3, kind: input, shape index: {}]   ;;  %s250_s5 = inlined_call_operand.vmem [shape: f32[16,128], index: 5, kind: output, shape index: {}]  }
   0x1   :  { %v168_v0 = vld [vmem:[%s245_s1 + $0x8] sm:$0xff]  ;;  %v167_v1 = vld [vmem:[%s245_s1] sm:$0xff]  ;;  %v172_v5 = vld [vmem:[%s249_s3 + $0x18] sm:$0xff] }
   0x2   :  { %54 = vmatpush.bf16.msra.mxu0 %v168_v0  ;;  %v21_v2 = vld [vmem:[%s246_s0] sm:$0xff]  ;;  %v22_v3 = vld [vmem:[%s246_s0 + $0x8] sm:$0xff]  ;;  %125 = vmatpush.bf16.msra.mxu1 %v172_v5  ;;  %v171_v6 = vld [vmem:[%s249_s3 + $0x10] sm:$0xff] }
   0x3   :  { %v23_v4 = vpack.c.bf16 %v22_v3, %v21_v2  ;;  %v170_v7 = vld [vmem:[%s249_s3 + $0x8] sm:$0xff]  ;;  %v173_v8 = vld [vmem:[%s247_s2] ss:$0 sm:$0xff] }
   0x4   :  { %v169_v9 = vld [vmem:[%s249_s3] sm:$0xff] }
   0x5   :  { %v174_v33 = vld [vmem:[%s248_s4] ss:$0 sm:$0xff] }
   0x6   :  { %55 = vmatpush.bf16.msra.mxu0 %v167_v1  ;;  %126 = vmatpush.bf16.msra.mxu1 %v171_v6 }
   0x9   :  { %149 = vmatmul.msk.bf16.vlgmr.msra.gmra.mxu0 %vm44_vm0, %v23_v4 }
   0xa   :  { %127 = vmatpush.bf16.msra.mxu1 %v170_v7 }
   0xe   :  { %128 = vmatpush.bf16.msra.mxu1 %v169_v9 }
  0x86   :  { %v57_v10 = vpop.f32.mrf.mxu0 }
  0x87   :  { %v58_v11 = vadd.f32 %v173_v8, %v57_v10 }
  0x89   :  { %v62_v12 = vmul.f32 %v58_v11, %v58_v11 }
  0x8b   :  { %v64_v13 = vmul.f32 %v62_v12, %v58_v11 }
  0x8d   :  { %v66_v14 = vmul.f32 0.044715, %v64_v13 }
  0x8e   :  { %v59_v15 = vpop.f32.mrf.mxu0 }
  0x8f   :  { %v68_v16 = vadd.f32 %v66_v14, %v58_v11  ;;  %v60_v17 = vadd.f32 %v173_v8, %v59_v15 }
  0x91   :  { %v70_v18 = vmul.f32 0.7978846, %v68_v16  ;;  %v63_v19 = vmul.f32 %v60_v17, %v60_v17 }
  0x93   :  { %v65_v20 = vmul.f32 %v63_v19, %v60_v17  ;;  %175 = vtanh.f32 %v70_v18 }
  0x95   :  { %v67_v21 = vmul.f32 0.044715, %v65_v20 }
  0x97   :  { %v69_v22 = vadd.f32 %v67_v21, %v60_v17 }
  0x99   :  { %v71_v23 = vmul.f32 0.7978846, %v69_v22  ;;  %v176_v24 = vpop.eup %175 }
  0x9a   :  { %v74_v25 = vadd.f32 1.0, %v176_v24 }
  0x9b   :  { %177 = vtanh.f32 %v71_v23 }
  0x9c   :  { %v76_v28 = vmul.f32 0.5, %v74_v25 }
  0x9e   :  { %v78_v30 = vmul.f32 %v76_v28, %v58_v11 }
  0xa1   :  { %v178_v26 = vpop.eup %177 }
  0xa2   :  { %v75_v27 = vadd.f32 1.0, %v178_v26 }
  0xa4   :  { %v77_v29 = vmul.f32 0.5, %v75_v27 }
  0xa6   :  { %v79_v31 = vmul.f32 %v77_v29, %v60_v17 }
  0xa8   :  { %v80_v32 = vpack.c.bf16 %v79_v31, %v78_v30 }
  0xaa   :  { %166 = vmatmul.msk.bf16.vlgmr.msra.gmra.mxu1 %vm117_vm1, %v80_v32 }
 0x127   :  { %v130_v34 = vpop.f32.mrf.mxu1 }
 0x128   :  { %v131_v35 = vadd.f32 %v174_v33, %v130_v34 }
 0x12a   :  { %135 = vst [vmem:[%s250_s5] sm:$0xff] %v131_v35 }
 0x12f   :  { %v132_v36 = vpop.f32.mrf.mxu1 }
 0x130   :  { %v133_v37 = vadd.f32 %v174_v33, %v132_v36 }
 0x132   :  { %136 = vst [vmem:[%s250_s5 + $0x8] sm:$0xff] %v133_v37 }

</bundles_post_ra>
